<compile_context>
chip_gen: v6e
topology: v6e:2x2x1
jax: 0.10.0
libtpu: 0.0.40
codegen_flags: <defaults>
</compile_context>

<pallas_src>
import jax
import jax.numpy as jnp
from jax.experimental import pallas as pl
from jax.experimental.pallas import tpu as pltpu

NUM_META = 4
SEQ = 8
DIM = 32
HEADS = 4
DIM_HEAD = DIM // HEADS
FF_HIDDEN = 4 * DIM
EPS = 1e-5
VEC_COLS = max(DIM, FF_HIDDEN)          # 128 -> lane-aligned packed vectors

PAD = (-NUM_META) % 8                   # pad rows so (PAD+NUM_META) % 8 == 0
T_PAD = PAD + NUM_META + SEQ            # padded per-batch block length (16)
BLK_SHIFT = T_PAD.bit_length() - 1
assert T_PAD == (1 << BLK_SHIFT), "block length must be a power of two"
assert SEQ % 8 == 0 and (PAD + NUM_META) % 8 == 0


def _layernorm(v, g, b):
    mu = jnp.mean(v, axis=-1, keepdims=True)
    var = jnp.mean((v - mu) ** 2, axis=-1, keepdims=True)
    return (v - mu) * jax.lax.rsqrt(var + EPS) * g + b


def decoder_kernel(meta_ref, x_ref, wqkv_ref, wo_ref, wff1_ref, wff2_ref,
                   vecs_ref, o_ref):
    B, _, D = x_ref.shape
    R = B * T_PAD

    # ---- fused pack([meta_tokens, x], 'b * d'), 8-sublane-aligned blocks ----
    # per-batch block layout: rows [0,PAD) zero pad, [PAD,PAD+NUM_META) meta,
    # [PAD+NUM_META, T_PAD) the real tokens -> every slab is 8-row aligned.
    meta = jnp.broadcast_to(meta_ref[...].astype(jnp.float32)[None],
                            (B, PAD + NUM_META, D))
    x0 = jnp.concatenate([meta, x_ref[...].astype(jnp.float32)],
                         axis=1).reshape(R, D)                 # (R, D) f32

    # packed per-layer vectors: rows 0..5 = ln{1,2,f} gain/bias,
    # row 6 = ff1 bias (FF_HIDDEN lanes), row 7 = ff2 bias (D lanes)
    ln1_g = vecs_ref[0:1, :D]
    ln1_b = vecs_ref[1:2, :D]
    ln2_g = vecs_ref[2:3, :D]
    ln2_b = vecs_ref[3:4, :D]
    lnf_g = vecs_ref[4:5, :D]
    lnf_b = vecs_ref[5:6, :D]
    bff1 = vecs_ref[6:7, :]
    bff2 = vecs_ref[7:8, :D]

    # ---- causal multi-head self-attention (pre-norm) ----
    h = _layernorm(x0, ln1_g, ln1_b)
    # single lane-dense QKV matmul: (R, D) @ (D, 3D), bf16 in / f32 acc
    qkv = jnp.dot(h.astype(jnp.bfloat16), wqkv_ref[...],
                  preferred_element_type=jnp.float32)          # (R, 3D)

    # closed-form block-diagonal causal mask (pad keys removed)
    row = jax.lax.broadcasted_iota(jnp.int32, (R, R), 0)
    col = jax.lax.broadcasted_iota(jnp.int32, (R, R), 1)
    same_blk = (row >> BLK_SHIFT) == (col >> BLK_SHIFT)
    key_ok = (col & (T_PAD - 1)) >= PAD
    mask = same_blk & (row >= col) & key_ok

    scale = DIM_HEAD ** -0.5
    head_outs = []
    for hd in range(HEADS):
        q_h = qkv[:, hd * DIM_HEAD:(hd + 1) * DIM_HEAD].astype(jnp.bfloat16)
        k_h = qkv[:, D + hd * DIM_HEAD:D + (hd + 1) * DIM_HEAD].astype(jnp.bfloat16)
        v_h = qkv[:, 2 * D + hd * DIM_HEAD:2 * D + (hd + 1) * DIM_HEAD]
        s = jnp.einsum('qe,ke->qk', q_h, k_h,
                       preferred_element_type=jnp.float32) * scale
        s = jnp.where(mask, s, -1e30)
        s = s - jnp.max(s, axis=-1, keepdims=True)
        p = jnp.exp(s)
        p = p * pl.reciprocal(jnp.sum(p, axis=-1, keepdims=True), approx=True)
        head_outs.append(jnp.dot(p.astype(jnp.bfloat16),
                                 v_h.astype(jnp.bfloat16),
                                 preferred_element_type=jnp.float32))  # (R, Dh)
    ao = jnp.concatenate(head_outs, axis=-1)                   # (R, H*Dh) head-major
    # fused output projection: one K=32 matmul instead of 4 K=8 pushes + sum
    attn = jnp.dot(ao.astype(jnp.bfloat16), wo_ref[...],
                   preferred_element_type=jnp.float32)         # (R, D)
    x1 = x0 + attn

    # ---- feedforward (pre-norm) ----
    h2 = _layernorm(x1, ln2_g, ln2_b)
    f = jnp.dot(h2.astype(jnp.bfloat16), wff1_ref[...],
                preferred_element_type=jnp.float32) + bff1
    f = jax.nn.gelu(f)
    f = jnp.dot(f.astype(jnp.bfloat16), wff2_ref[...],
                preferred_element_type=jnp.float32) + bff2
    x2 = x1 + f

    # ---- final decoder norm + fused unpack (drop pad + meta rows) ----
    y = _layernorm(x2, lnf_g, lnf_b)
    # aligned 8-row slab per batch block (rows PAD+NUM_META .. T_PAD)
    o_ref[...] = y.reshape(B, T_PAD, D)[:, PAD + NUM_META:, :].astype(o_ref.dtype)


def meta_token_wrapper_forward(x, meta_tokens, params):
    """MetaTokenWrapper.forward: pack meta tokens + x, run fn, unpack."""
    bsz, seq, dim = x.shape
    assert seq == SEQ and dim == DIM

    # host-side layout plumbing only: pad meta to an 8-row-aligned slab so the
    # in-kernel pack touches whole (8,128) sublane groups.
    meta_pad = jnp.concatenate(
        [jnp.zeros((PAD, dim), meta_tokens.dtype), meta_tokens], axis=0)

    r_pad = bsz * T_PAD
    flops = int(2 * r_pad * dim * (3 * dim)                      # fused QKV
                + 4 * HEADS * r_pad * r_pad * DIM_HEAD           # scores + PV
                + 2 * r_pad * dim * dim                          # output proj
                + 4 * r_pad * dim * FF_HIDDEN)                   # FF
    transcendentals = int(HEADS * r_pad * r_pad + r_pad * FF_HIDDEN
                          + 8 * r_pad)
    bytes_accessed = int(
        x.size * x.dtype.itemsize
        + meta_pad.size * meta_pad.dtype.itemsize
        + sum(int(p.size) * p.dtype.itemsize for p in params)
        + bsz * seq * dim * x.dtype.itemsize)

    n_inputs = 2 + len(params)
    # TODO(synk): at production sizes add a "parallel" batch grid axis
    # (v7x megacore) + flash-style KV tiling and set vmem_limit_bytes (v6e).
    out = pl.pallas_call(
        decoder_kernel,
        out_shape=jax.ShapeDtypeStruct((bsz, seq, dim), x.dtype),
        in_specs=[pl.BlockSpec(memory_space=pltpu.MemorySpace.VMEM)] * n_inputs,
        out_specs=pl.BlockSpec(memory_space=pltpu.MemorySpace.VMEM),
        cost_estimate=pl.CostEstimate(flops=flops,
                                      transcendentals=transcendentals,
                                      bytes_accessed=bytes_accessed),
    )(meta_pad, x, *params)
    return out


# ---------------- pure-JAX reference (same math, same precision points) ----------------
def _ref_forward(x, meta_tokens, params):
    wqkv, wo, wff1, wff2, vecs = params
    bsz, seq, dim = x.shape
    t_tot = NUM_META + seq
    ln1_g, ln1_b = vecs[0, :dim], vecs[1, :dim]
    ln2_g, ln2_b = vecs[2, :dim], vecs[3, :dim]
    lnf_g, lnf_b = vecs[4, :dim], vecs[5, :dim]
    bff1, bff2 = vecs[6, :], vecs[7, :dim]

    mt = jnp.broadcast_to(meta_tokens[None], (bsz, NUM_META, dim))
    z = jnp.concatenate([mt, x], axis=1).astype(jnp.float32)   # pack 'b * d'

    h = _layernorm(z, ln1_g, ln1_b)
    qkv = jnp.einsum('btd,de->bte', h.astype(jnp.bfloat16), wqkv,
                     preferred_element_type=jnp.float32)
    q = qkv[..., :dim].reshape(bsz, t_tot, HEADS, DIM_HEAD)
    k = qkv[..., dim:2 * dim].reshape(bsz, t_tot, HEADS, DIM_HEAD)
    v = qkv[..., 2 * dim:].reshape(bsz, t_tot, HEADS, DIM_HEAD)
    s = jnp.einsum('bqhe,bkhe->bhqk', q.astype(jnp.bfloat16),
                   k.astype(jnp.bfloat16),
                   preferred_element_type=jnp.float32) * (DIM_HEAD ** -0.5)
    causal = jnp.arange(t_tot)[:, None] >= jnp.arange(t_tot)[None, :]
    s = jnp.where(causal[None, None], s, -1e30)
    s = s - jnp.max(s, axis=-1, keepdims=True)
    p = jnp.exp(s)
    p = p / jnp.sum(p, axis=-1, keepdims=True)
    ao = jnp.einsum('bhqk,bkhe->bqhe', p.astype(jnp.bfloat16),
                    v.astype(jnp.bfloat16), preferred_element_type=jnp.float32)
    attn = jnp.einsum('btk,kd->btd',
                      ao.reshape(bsz, t_tot, dim).astype(jnp.bfloat16), wo,
                      preferred_element_type=jnp.float32)
    x1 = z + attn

    h2 = _layernorm(x1, ln2_g, ln2_b)
    f = jax.nn.gelu(jnp.einsum('btd,df->btf', h2.astype(jnp.bfloat16), wff1,
                               preferred_element_type=jnp.float32) + bff1)
    f = jnp.einsum('btf,fd->btd', f.astype(jnp.bfloat16), wff2,
                   preferred_element_type=jnp.float32) + bff2
    x2 = x1 + f

    y = _layernorm(x2, lnf_g, lnf_b)
    return y[:, NUM_META:, :]                                  # unpack 'b * d'


if __name__ == "__main__":
    key = jax.random.PRNGKey(0)
    kx, k1, k4, k5, k6, k7 = jax.random.split(key, 6)

    B = 2
    x = jax.random.normal(kx, (B, SEQ, DIM), dtype=jnp.float32)

    # meta_tokens initialized to zeros, exactly as nn.Parameter(torch.zeros(...))
    meta_tokens = jnp.zeros((NUM_META, DIM), dtype=jnp.float32)

    # Synthesized Decoder `fn` weights, fused / lane-dense layouts, bf16 MXU operands.
    # wqkv columns: [q_h0..q_h3 | k_h0..k_h3 | v_h0..v_h3], each head = DIM_HEAD lanes.
    wqkv = (0.02 * jax.random.normal(k1, (DIM, 3 * DIM))).astype(jnp.bfloat16)
    # wo rows are head-major (row index = h*DIM_HEAD + e).
    wo = (0.02 * jax.random.normal(k4, (DIM, DIM))).astype(jnp.bfloat16)
    wff1 = (0.02 * jax.random.normal(k5, (DIM, FF_HIDDEN))).astype(jnp.bfloat16)
    wff2 = (0.02 * jax.random.normal(k6, (FF_HIDDEN, DIM))).astype(jnp.bfloat16)

    # layernorm gains/biases + ff biases packed into one (8, 128) f32 buffer
    small = 0.1 * jax.random.normal(k7, (8, VEC_COLS), dtype=jnp.float32)
    vecs = jnp.zeros((8, VEC_COLS), jnp.float32)
    vecs = vecs.at[0, :DIM].set(1.0 + small[0, :DIM])   # ln1 gain
    vecs = vecs.at[1, :DIM].set(small[1, :DIM])         # ln1 bias
    vecs = vecs.at[2, :DIM].set(1.0 + small[2, :DIM])   # ln2 gain
    vecs = vecs.at[3, :DIM].set(small[3, :DIM])         # ln2 bias
    vecs = vecs.at[4, :DIM].set(1.0 + small[4, :DIM])   # final ln gain
    vecs = vecs.at[5, :DIM].set(small[5, :DIM])         # final ln bias
    vecs = vecs.at[6, :].set(small[6, :])               # ff1 bias (FF_HIDDEN)
    vecs = vecs.at[7, :DIM].set(small[7, :DIM])         # ff2 bias

    params = [wqkv, wo, wff1, wff2, vecs]

    out = meta_token_wrapper_forward(x, meta_tokens, params)
    out = jax.block_until_ready(out)

    ref = _ref_forward(x, meta_tokens, params)
    assert out.shape == (B, SEQ, DIM), out.shape
    err = float(jnp.max(jnp.abs(out - ref)))
    assert jnp.allclose(out, ref, atol=2e-3, rtol=2e-3), err

    print("KERNEL_OK")
</pallas_src>

<mosaic_0001>
module attributes {stable_mosaic.version = 11 : i64} {
  func.func @decoder_kernel(%arg0: memref<8x32xf32, #tpu.memory_space<vmem>>, %arg1: memref<2x8x32xf32, #tpu.memory_space<vmem>>, %arg2: memref<32x96xbf16, #tpu.memory_space<vmem>>, %arg3: memref<32x32xbf16, #tpu.memory_space<vmem>>, %arg4: memref<32x128xbf16, #tpu.memory_space<vmem>>, %arg5: memref<128x32xbf16, #tpu.memory_space<vmem>>, %arg6: memref<8x128xf32, #tpu.memory_space<vmem>>, %arg7: memref<2x8x32xf32, #tpu.memory_space<vmem>>) attributes {dimension_semantics = [], scalar_prefetch = 0 : i64, scratch_operands = 0 : i64, tpu.core_type = #tpu.core_type<tc>} {
    %c0 = arith.constant 0 : index
    %c0_0 = arith.constant 0 : index
    %0 = vector.load %arg0[%c0, %c0_0] : memref<8x32xf32, #tpu.memory_space<vmem>>, vector<8x32xf32>
    %1 = vector.shape_cast %0 : vector<8x32xf32> to vector<1x8x32xf32>
    %2 = vector.shape_cast %1 : vector<1x8x32xf32> to vector<1x8x32xf32>
    %3 = vector.broadcast %2 : vector<1x8x32xf32> to vector<2x8x32xf32>
    %c0_1 = arith.constant 0 : index
    %c0_2 = arith.constant 0 : index
    %c0_3 = arith.constant 0 : index
    %4 = vector.load %arg1[%c0_1, %c0_2, %c0_3] : memref<2x8x32xf32, #tpu.memory_space<vmem>>, vector<2x8x32xf32>
    %5 = tpu.concatenate %3, %4 in 1 : vector<2x8x32xf32>, vector<2x8x32xf32> -> vector<2x16x32xf32>
    %6 = vector.shape_cast %5 : vector<2x16x32xf32> to vector<32x32xf32>
    %c0_4 = arith.constant 0 : index
    %c0_5 = arith.constant 0 : index
    %7 = vector.load %arg6[%c0_4, %c0_5] : memref<8x128xf32, #tpu.memory_space<vmem>>, vector<1x32xf32>
    %c1 = arith.constant 1 : index
    %c0_6 = arith.constant 0 : index
    %8 = vector.load %arg6[%c1, %c0_6] : memref<8x128xf32, #tpu.memory_space<vmem>>, vector<1x32xf32>
    %c2 = arith.constant 2 : index
    %c0_7 = arith.constant 0 : index
    %9 = vector.load %arg6[%c2, %c0_7] : memref<8x128xf32, #tpu.memory_space<vmem>>, vector<1x32xf32>
    %c3 = arith.constant 3 : index
    %c0_8 = arith.constant 0 : index
    %10 = vector.load %arg6[%c3, %c0_8] : memref<8x128xf32, #tpu.memory_space<vmem>>, vector<1x32xf32>
    %c4 = arith.constant 4 : index
    %c0_9 = arith.constant 0 : index
    %11 = vector.load %arg6[%c4, %c0_9] : memref<8x128xf32, #tpu.memory_space<vmem>>, vector<1x32xf32>
    %c5 = arith.constant 5 : index
    %c0_10 = arith.constant 0 : index
    %12 = vector.load %arg6[%c5, %c0_10] : memref<8x128xf32, #tpu.memory_space<vmem>>, vector<1x32xf32>
    %c6 = arith.constant 6 : index
    %c0_11 = arith.constant 0 : index
    %13 = vector.load %arg6[%c6, %c0_11] : memref<8x128xf32, #tpu.memory_space<vmem>>, vector<1x128xf32>
    %c7 = arith.constant 7 : index
    %c0_12 = arith.constant 0 : index
    %14 = vector.load %arg6[%c7, %c0_12] : memref<8x128xf32, #tpu.memory_space<vmem>>, vector<1x32xf32>
    %cst = arith.constant dense<0.000000e+00> : vector<32xf32>
    %15 = vector.multi_reduction <add>, %6, %cst [1] : vector<32x32xf32> to vector<32xf32>
    %16 = vector.shape_cast %15 : vector<32xf32> to vector<32x1xf32>
    %cst_13 = arith.constant 3.200000e+01 : f32
    %17 = vector.broadcast %cst_13 : f32 to vector<32x1xf32>
    %18 = arith.divf %16, %17 : vector<32x1xf32>
    %19 = vector.broadcast %18 : vector<32x1xf32> to vector<32x32xf32>
    %20 = arith.subf %6, %19 : vector<32x32xf32>
    %21 = arith.mulf %20, %20 : vector<32x32xf32>
    %cst_14 = arith.constant dense<0.000000e+00> : vector<32xf32>
    %22 = vector.multi_reduction <add>, %21, %cst_14 [1] : vector<32x32xf32> to vector<32xf32>
    %23 = vector.shape_cast %22 : vector<32xf32> to vector<32x1xf32>
    %cst_15 = arith.constant 3.200000e+01 : f32
    %24 = vector.broadcast %cst_15 : f32 to vector<32x1xf32>
    %25 = arith.divf %23, %24 : vector<32x1xf32>
    %26 = vector.broadcast %18 : vector<32x1xf32> to vector<32x32xf32>
    %27 = arith.subf %6, %26 : vector<32x32xf32>
    %cst_16 = arith.constant 9.99999974E-6 : f32
    %28 = vector.broadcast %cst_16 : f32 to vector<32x1xf32>
    %29 = arith.addf %25, %28 : vector<32x1xf32>
    %30 = math.rsqrt %29 : vector<32x1xf32>
    %31 = vector.broadcast %30 : vector<32x1xf32> to vector<32x32xf32>
    %32 = arith.mulf %27, %31 : vector<32x32xf32>
    %33 = vector.broadcast %7 : vector<1x32xf32> to vector<32x32xf32>
    %34 = arith.mulf %32, %33 : vector<32x32xf32>
    %35 = vector.broadcast %8 : vector<1x32xf32> to vector<32x32xf32>
    %36 = arith.addf %34, %35 : vector<32x32xf32>
    %37 = arith.truncf %36 : vector<32x32xf32> to vector<32x32xbf16>
    %c0_17 = arith.constant 0 : index
    %c0_18 = arith.constant 0 : index
    %38 = vector.load %arg2[%c0_17, %c0_18] : memref<32x96xbf16, #tpu.memory_space<vmem>>, vector<32x96xbf16>
    %cst_19 = arith.constant dense<0.000000e+00> : vector<32x96xf32>
    %39 = tpu.matmul %37, %38, %cst_19 {dimension_numbers = #tpu.dot_dimension_numbers<[1], [0], [0], [1], [0, 0, 1, 1], [], []>} : vector<32x32xbf16>, vector<32x96xbf16>, vector<32x96xf32> -> vector<32x96xf32>
    %40 = tpu.iota {dimensions = array<i32: 0>} : vector<32x32xi32>
    %41 = tpu.iota {dimensions = array<i32: 1>} : vector<32x32xi32>
    %c4_i32 = arith.constant 4 : i32
    %42 = vector.broadcast %c4_i32 : i32 to vector<32x32xi32>
    %43 = arith.shrsi %40, %42 : vector<32x32xi32>
    %c4_i32_20 = arith.constant 4 : i32
    %44 = vector.broadcast %c4_i32_20 : i32 to vector<32x32xi32>
    %45 = arith.shrsi %41, %44 : vector<32x32xi32>
    %46 = arith.cmpi eq, %43, %45 : vector<32x32xi32>
    %c15_i32 = arith.constant 15 : i32
    %47 = vector.broadcast %c15_i32 : i32 to vector<32x32xi32>
    %48 = arith.andi %41, %47 : vector<32x32xi32>
    %c4_i32_21 = arith.constant 4 : i32
    %49 = vector.broadcast %c4_i32_21 : i32 to vector<32x32xi32>
    %50 = arith.cmpi sge, %48, %49 : vector<32x32xi32>
    %51 = arith.cmpi sge, %40, %41 : vector<32x32xi32>
    %52 = arith.andi %46, %51 : vector<32x32xi1>
    %53 = arith.andi %52, %50 : vector<32x32xi1>
    %54 = vector.extract_strided_slice %39 {offsets = [0, 0], sizes = [32, 8], strides = [1, 1]} : vector<32x96xf32> to vector<32x8xf32>
    %55 = arith.truncf %54 : vector<32x8xf32> to vector<32x8xbf16>
    %56 = vector.extract_strided_slice %39 {offsets = [0, 32], sizes = [32, 8], strides = [1, 1]} : vector<32x96xf32> to vector<32x8xf32>
    %57 = arith.truncf %56 : vector<32x8xf32> to vector<32x8xbf16>
    %58 = vector.extract_strided_slice %39 {offsets = [0, 64], sizes = [32, 8], strides = [1, 1]} : vector<32x96xf32> to vector<32x8xf32>
    "tpu.trace_start"() <{level = 10 : i32, message = "qe,ke->qk"}> : () -> ()
    %cst_22 = arith.constant dense<0.000000e+00> : vector<32x32xf32>
    %59 = tpu.matmul %55, %57, %cst_22 {dimension_numbers = #tpu.dot_dimension_numbers<[1], [1], [0], [0], [0, 0, 1, 0], [], []>} : vector<32x8xbf16>, vector<32x8xbf16>, vector<32x32xf32> -> vector<32x32xf32>
    "tpu.trace_stop"() : () -> ()
    %cst_23 = arith.constant 0.353553385 : f32
    %60 = vector.broadcast %cst_23 : f32 to vector<32x32xf32>
    %61 = arith.mulf %59, %60 : vector<32x32xf32>
    %cst_24 = arith.constant -1.000000e+30 : f32
    %62 = vector.broadcast %cst_24 : f32 to vector<32x32xf32>
    %63 = arith.select %53, %61, %62 : vector<32x32xi1>, vector<32x32xf32>
    %cst_25 = arith.constant dense<0xFF800000> : vector<32xf32>
    %64 = vector.multi_reduction <maximumf>, %63, %cst_25 [1] : vector<32x32xf32> to vector<32xf32>
    %65 = vector.shape_cast %64 : vector<32xf32> to vector<32x1xf32>
    %66 = vector.broadcast %65 : vector<32x1xf32> to vector<32x32xf32>
    %67 = arith.subf %63, %66 : vector<32x32xf32>
    %68 = math.exp %67 : vector<32x32xf32>
    %cst_26 = arith.constant dense<0.000000e+00> : vector<32xf32>
    %69 = vector.multi_reduction <add>, %68, %cst_26 [1] : vector<32x32xf32> to vector<32xf32>
    %70 = vector.shape_cast %69 : vector<32xf32> to vector<32x1xf32>
    %71 = tpu.reciprocal %70 {approx = true} : vector<32x1xf32> -> vector<32x1xf32>
    %72 = vector.broadcast %71 : vector<32x1xf32> to vector<32x32xf32>
    %73 = arith.mulf %68, %72 : vector<32x32xf32>
    %74 = arith.truncf %73 : vector<32x32xf32> to vector<32x32xbf16>
    %75 = arith.truncf %58 : vector<32x8xf32> to vector<32x8xbf16>
    %cst_27 = arith.constant dense<0.000000e+00> : vector<32x8xf32>
    %76 = tpu.matmul %74, %75, %cst_27 {dimension_numbers = #tpu.dot_dimension_numbers<[1], [0], [0], [1], [0, 0, 1, 1], [], []>} : vector<32x32xbf16>, vector<32x8xbf16>, vector<32x8xf32> -> vector<32x8xf32>
    %77 = vector.extract_strided_slice %39 {offsets = [0, 8], sizes = [32, 8], strides = [1, 1]} : vector<32x96xf32> to vector<32x8xf32>
    %78 = arith.truncf %77 : vector<32x8xf32> to vector<32x8xbf16>
    %79 = vector.extract_strided_slice %39 {offsets = [0, 40], sizes = [32, 8], strides = [1, 1]} : vector<32x96xf32> to vector<32x8xf32>
    %80 = arith.truncf %79 : vector<32x8xf32> to vector<32x8xbf16>
    %81 = vector.extract_strided_slice %39 {offsets = [0, 72], sizes = [32, 8], strides = [1, 1]} : vector<32x96xf32> to vector<32x8xf32>
    "tpu.trace_start"() <{level = 10 : i32, message = "qe,ke->qk"}> : () -> ()
    %cst_28 = arith.constant dense<0.000000e+00> : vector<32x32xf32>
    %82 = tpu.matmul %78, %80, %cst_28 {dimension_numbers = #tpu.dot_dimension_numbers<[1], [1], [0], [0], [0, 0, 1, 0], [], []>} : vector<32x8xbf16>, vector<32x8xbf16>, vector<32x32xf32> -> vector<32x32xf32>
    "tpu.trace_stop"() : () -> ()
    %cst_29 = arith.constant 0.353553385 : f32
    %83 = vector.broadcast %cst_29 : f32 to vector<32x32xf32>
    %84 = arith.mulf %82, %83 : vector<32x32xf32>
    %cst_30 = arith.constant -1.000000e+30 : f32
    %85 = vector.broadcast %cst_30 : f32 to vector<32x32xf32>
    %86 = arith.select %53, %84, %85 : vector<32x32xi1>, vector<32x32xf32>
    %cst_31 = arith.constant dense<0xFF800000> : vector<32xf32>
    %87 = vector.multi_reduction <maximumf>, %86, %cst_31 [1] : vector<32x32xf32> to vector<32xf32>
    %88 = vector.shape_cast %87 : vector<32xf32> to vector<32x1xf32>
    %89 = vector.broadcast %88 : vector<32x1xf32> to vector<32x32xf32>
    %90 = arith.subf %86, %89 : vector<32x32xf32>
    %91 = math.exp %90 : vector<32x32xf32>
    %cst_32 = arith.constant dense<0.000000e+00> : vector<32xf32>
    %92 = vector.multi_reduction <add>, %91, %cst_32 [1] : vector<32x32xf32> to vector<32xf32>
    %93 = vector.shape_cast %92 : vector<32xf32> to vector<32x1xf32>
    %94 = tpu.reciprocal %93 {approx = true} : vector<32x1xf32> -> vector<32x1xf32>
    %95 = vector.broadcast %94 : vector<32x1xf32> to vector<32x32xf32>
    %96 = arith.mulf %91, %95 : vector<32x32xf32>
    %97 = arith.truncf %96 : vector<32x32xf32> to vector<32x32xbf16>
    %98 = arith.truncf %81 : vector<32x8xf32> to vector<32x8xbf16>
    %cst_33 = arith.constant dense<0.000000e+00> : vector<32x8xf32>
    %99 = tpu.matmul %97, %98, %cst_33 {dimension_numbers = #tpu.dot_dimension_numbers<[1], [0], [0], [1], [0, 0, 1, 1], [], []>} : vector<32x32xbf16>, vector<32x8xbf16>, vector<32x8xf32> -> vector<32x8xf32>
    %100 = vector.extract_strided_slice %39 {offsets = [0, 16], sizes = [32, 8], strides = [1, 1]} : vector<32x96xf32> to vector<32x8xf32>
    %101 = arith.truncf %100 : vector<32x8xf32> to vector<32x8xbf16>
    %102 = vector.extract_strided_slice %39 {offsets = [0, 48], sizes = [32, 8], strides = [1, 1]} : vector<32x96xf32> to vector<32x8xf32>
    %103 = arith.truncf %102 : vector<32x8xf32> to vector<32x8xbf16>
    %104 = vector.extract_strided_slice %39 {offsets = [0, 80], sizes = [32, 8], strides = [1, 1]} : vector<32x96xf32> to vector<32x8xf32>
    "tpu.trace_start"() <{level = 10 : i32, message = "qe,ke->qk"}> : () -> ()
    %cst_34 = arith.constant dense<0.000000e+00> : vector<32x32xf32>
    %105 = tpu.matmul %101, %103, %cst_34 {dimension_numbers = #tpu.dot_dimension_numbers<[1], [1], [0], [0], [0, 0, 1, 0], [], []>} : vector<32x8xbf16>, vector<32x8xbf16>, vector<32x32xf32> -> vector<32x32xf32>
    "tpu.trace_stop"() : () -> ()
    %cst_35 = arith.constant 0.353553385 : f32
    %106 = vector.broadcast %cst_35 : f32 to vector<32x32xf32>
    %107 = arith.mulf %105, %106 : vector<32x32xf32>
    %cst_36 = arith.constant -1.000000e+30 : f32
    %108 = vector.broadcast %cst_36 : f32 to vector<32x32xf32>
    %109 = arith.select %53, %107, %108 : vector<32x32xi1>, vector<32x32xf32>
    %cst_37 = arith.constant dense<0xFF800000> : vector<32xf32>
    %110 = vector.multi_reduction <maximumf>, %109, %cst_37 [1] : vector<32x32xf32> to vector<32xf32>
    %111 = vector.shape_cast %110 : vector<32xf32> to vector<32x1xf32>
    %112 = vector.broadcast %111 : vector<32x1xf32> to vector<32x32xf32>
    %113 = arith.subf %109, %112 : vector<32x32xf32>
    %114 = math.exp %113 : vector<32x32xf32>
    %cst_38 = arith.constant dense<0.000000e+00> : vector<32xf32>
    %115 = vector.multi_reduction <add>, %114, %cst_38 [1] : vector<32x32xf32> to vector<32xf32>
    %116 = vector.shape_cast %115 : vector<32xf32> to vector<32x1xf32>
    %117 = tpu.reciprocal %116 {approx = true} : vector<32x1xf32> -> vector<32x1xf32>
    %118 = vector.broadcast %117 : vector<32x1xf32> to vector<32x32xf32>
    %119 = arith.mulf %114, %118 : vector<32x32xf32>
    %120 = arith.truncf %119 : vector<32x32xf32> to vector<32x32xbf16>
    %121 = arith.truncf %104 : vector<32x8xf32> to vector<32x8xbf16>
    %cst_39 = arith.constant dense<0.000000e+00> : vector<32x8xf32>
    %122 = tpu.matmul %120, %121, %cst_39 {dimension_numbers = #tpu.dot_dimension_numbers<[1], [0], [0], [1], [0, 0, 1, 1], [], []>} : vector<32x32xbf16>, vector<32x8xbf16>, vector<32x8xf32> -> vector<32x8xf32>
    %123 = vector.extract_strided_slice %39 {offsets = [0, 24], sizes = [32, 8], strides = [1, 1]} : vector<32x96xf32> to vector<32x8xf32>
    %124 = arith.truncf %123 : vector<32x8xf32> to vector<32x8xbf16>
    %125 = vector.extract_strided_slice %39 {offsets = [0, 56], sizes = [32, 8], strides = [1, 1]} : vector<32x96xf32> to vector<32x8xf32>
    %126 = arith.truncf %125 : vector<32x8xf32> to vector<32x8xbf16>
    %127 = vector.extract_strided_slice %39 {offsets = [0, 88], sizes = [32, 8], strides = [1, 1]} : vector<32x96xf32> to vector<32x8xf32>
    "tpu.trace_start"() <{level = 10 : i32, message = "qe,ke->qk"}> : () -> ()
    %cst_40 = arith.constant dense<0.000000e+00> : vector<32x32xf32>
    %128 = tpu.matmul %124, %126, %cst_40 {dimension_numbers = #tpu.dot_dimension_numbers<[1], [1], [0], [0], [0, 0, 1, 0], [], []>} : vector<32x8xbf16>, vector<32x8xbf16>, vector<32x32xf32> -> vector<32x32xf32>
    "tpu.trace_stop"() : () -> ()
    %cst_41 = arith.constant 0.353553385 : f32
    %129 = vector.broadcast %cst_41 : f32 to vector<32x32xf32>
    %130 = arith.mulf %128, %129 : vector<32x32xf32>
    %cst_42 = arith.constant -1.000000e+30 : f32
    %131 = vector.broadcast %cst_42 : f32 to vector<32x32xf32>
    %132 = arith.select %53, %130, %131 : vector<32x32xi1>, vector<32x32xf32>
    %cst_43 = arith.constant dense<0xFF800000> : vector<32xf32>
    %133 = vector.multi_reduction <maximumf>, %132, %cst_43 [1] : vector<32x32xf32> to vector<32xf32>
    %134 = vector.shape_cast %133 : vector<32xf32> to vector<32x1xf32>
    %135 = vector.broadcast %134 : vector<32x1xf32> to vector<32x32xf32>
    %136 = arith.subf %132, %135 : vector<32x32xf32>
    %137 = math.exp %136 : vector<32x32xf32>
    %cst_44 = arith.constant dense<0.000000e+00> : vector<32xf32>
    %138 = vector.multi_reduction <add>, %137, %cst_44 [1] : vector<32x32xf32> to vector<32xf32>
    %139 = vector.shape_cast %138 : vector<32xf32> to vector<32x1xf32>
    %140 = tpu.reciprocal %139 {approx = true} : vector<32x1xf32> -> vector<32x1xf32>
    %141 = vector.broadcast %140 : vector<32x1xf32> to vector<32x32xf32>
    %142 = arith.mulf %137, %141 : vector<32x32xf32>
    %143 = arith.truncf %142 : vector<32x32xf32> to vector<32x32xbf16>
    %144 = arith.truncf %127 : vector<32x8xf32> to vector<32x8xbf16>
    %cst_45 = arith.constant dense<0.000000e+00> : vector<32x8xf32>
    %145 = tpu.matmul %143, %144, %cst_45 {dimension_numbers = #tpu.dot_dimension_numbers<[1], [0], [0], [1], [0, 0, 1, 1], [], []>} : vector<32x32xbf16>, vector<32x8xbf16>, vector<32x8xf32> -> vector<32x8xf32>
    %146 = tpu.concatenate %76, %99, %122, %145 in 1 : vector<32x8xf32>, vector<32x8xf32>, vector<32x8xf32>, vector<32x8xf32> -> vector<32x32xf32>
    %147 = arith.truncf %146 : vector<32x32xf32> to vector<32x32xbf16>
    %c0_46 = arith.constant 0 : index
    %c0_47 = arith.constant 0 : index
    %148 = vector.load %arg3[%c0_46, %c0_47] : memref<32x32xbf16, #tpu.memory_space<vmem>>, vector<32x32xbf16>
    %cst_48 = arith.constant dense<0.000000e+00> : vector<32x32xf32>
    %149 = tpu.matmul %147, %148, %cst_48 {dimension_numbers = #tpu.dot_dimension_numbers<[1], [0], [0], [1], [0, 0, 1, 1], [], []>} : vector<32x32xbf16>, vector<32x32xbf16>, vector<32x32xf32> -> vector<32x32xf32>
    %150 = arith.addf %6, %149 : vector<32x32xf32>
    %cst_49 = arith.constant dense<0.000000e+00> : vector<32xf32>
    %151 = vector.multi_reduction <add>, %150, %cst_49 [1] : vector<32x32xf32> to vector<32xf32>
    %152 = vector.shape_cast %151 : vector<32xf32> to vector<32x1xf32>
    %cst_50 = arith.constant 3.200000e+01 : f32
    %153 = vector.broadcast %cst_50 : f32 to vector<32x1xf32>
    %154 = arith.divf %152, %153 : vector<32x1xf32>
    %155 = vector.broadcast %154 : vector<32x1xf32> to vector<32x32xf32>
    %156 = arith.subf %150, %155 : vector<32x32xf32>
    %157 = arith.mulf %156, %156 : vector<32x32xf32>
    %cst_51 = arith.constant dense<0.000000e+00> : vector<32xf32>
    %158 = vector.multi_reduction <add>, %157, %cst_51 [1] : vector<32x32xf32> to vector<32xf32>
    %159 = vector.shape_cast %158 : vector<32xf32> to vector<32x1xf32>
    %cst_52 = arith.constant 3.200000e+01 : f32
    %160 = vector.broadcast %cst_52 : f32 to vector<32x1xf32>
    %161 = arith.divf %159, %160 : vector<32x1xf32>
    %162 = vector.broadcast %154 : vector<32x1xf32> to vector<32x32xf32>
    %163 = arith.subf %150, %162 : vector<32x32xf32>
    %cst_53 = arith.constant 9.99999974E-6 : f32
    %164 = vector.broadcast %cst_53 : f32 to vector<32x1xf32>
    %165 = arith.addf %161, %164 : vector<32x1xf32>
    %166 = math.rsqrt %165 : vector<32x1xf32>
    %167 = vector.broadcast %166 : vector<32x1xf32> to vector<32x32xf32>
    %168 = arith.mulf %163, %167 : vector<32x32xf32>
    %169 = vector.broadcast %9 : vector<1x32xf32> to vector<32x32xf32>
    %170 = arith.mulf %168, %169 : vector<32x32xf32>
    %171 = vector.broadcast %10 : vector<1x32xf32> to vector<32x32xf32>
    %172 = arith.addf %170, %171 : vector<32x32xf32>
    %173 = arith.truncf %172 : vector<32x32xf32> to vector<32x32xbf16>
    %c0_54 = arith.constant 0 : index
    %c0_55 = arith.constant 0 : index
    %174 = vector.load %arg4[%c0_54, %c0_55] : memref<32x128xbf16, #tpu.memory_space<vmem>>, vector<32x128xbf16>
    %cst_56 = arith.constant dense<0.000000e+00> : vector<32x128xf32>
    %175 = tpu.matmul %173, %174, %cst_56 {dimension_numbers = #tpu.dot_dimension_numbers<[1], [0], [0], [1], [0, 0, 1, 1], [], []>} : vector<32x32xbf16>, vector<32x128xbf16>, vector<32x128xf32> -> vector<32x128xf32>
    %176 = vector.broadcast %13 : vector<1x128xf32> to vector<32x128xf32>
    %177 = arith.addf %175, %176 : vector<32x128xf32>
    %178 = arith.mulf %177, %177 : vector<32x128xf32>
    %179 = arith.mulf %177, %178 : vector<32x128xf32>
    %cst_57 = arith.constant 4.471500e-02 : f32
    %180 = vector.broadcast %cst_57 : f32 to vector<32x128xf32>
    %181 = arith.mulf %180, %179 : vector<32x128xf32>
    %182 = arith.addf %177, %181 : vector<32x128xf32>
    %cst_58 = arith.constant 0.797884583 : f32
    %183 = vector.broadcast %cst_58 : f32 to vector<32x128xf32>
    %184 = arith.mulf %183, %182 : vector<32x128xf32>
    %185 = math.tanh %184 : vector<32x128xf32>
    %cst_59 = arith.constant 1.000000e+00 : f32
    %186 = vector.broadcast %cst_59 : f32 to vector<32x128xf32>
    %187 = arith.addf %186, %185 : vector<32x128xf32>
    %cst_60 = arith.constant 5.000000e-01 : f32
    %188 = vector.broadcast %cst_60 : f32 to vector<32x128xf32>
    %189 = arith.mulf %188, %187 : vector<32x128xf32>
    %190 = arith.mulf %177, %189 : vector<32x128xf32>
    %191 = arith.truncf %190 : vector<32x128xf32> to vector<32x128xbf16>
    %c0_61 = arith.constant 0 : index
    %c0_62 = arith.constant 0 : index
    %192 = vector.load %arg5[%c0_61, %c0_62] : memref<128x32xbf16, #tpu.memory_space<vmem>>, vector<128x32xbf16>
    %cst_63 = arith.constant dense<0.000000e+00> : vector<32x32xf32>
    %193 = tpu.matmul %191, %192, %cst_63 {dimension_numbers = #tpu.dot_dimension_numbers<[1], [0], [0], [1], [0, 0, 1, 1], [], []>} : vector<32x128xbf16>, vector<128x32xbf16>, vector<32x32xf32> -> vector<32x32xf32>
    %194 = vector.broadcast %14 : vector<1x32xf32> to vector<32x32xf32>
    %195 = arith.addf %193, %194 : vector<32x32xf32>
    %196 = arith.addf %150, %195 : vector<32x32xf32>
    %cst_64 = arith.constant dense<0.000000e+00> : vector<32xf32>
    %197 = vector.multi_reduction <add>, %196, %cst_64 [1] : vector<32x32xf32> to vector<32xf32>
    %198 = vector.shape_cast %197 : vector<32xf32> to vector<32x1xf32>
    %cst_65 = arith.constant 3.200000e+01 : f32
    %199 = vector.broadcast %cst_65 : f32 to vector<32x1xf32>
    %200 = arith.divf %198, %199 : vector<32x1xf32>
    %201 = vector.broadcast %200 : vector<32x1xf32> to vector<32x32xf32>
    %202 = arith.subf %196, %201 : vector<32x32xf32>
    %203 = arith.mulf %202, %202 : vector<32x32xf32>
    %cst_66 = arith.constant dense<0.000000e+00> : vector<32xf32>
    %204 = vector.multi_reduction <add>, %203, %cst_66 [1] : vector<32x32xf32> to vector<32xf32>
    %205 = vector.shape_cast %204 : vector<32xf32> to vector<32x1xf32>
    %cst_67 = arith.constant 3.200000e+01 : f32
    %206 = vector.broadcast %cst_67 : f32 to vector<32x1xf32>
    %207 = arith.divf %205, %206 : vector<32x1xf32>
    %208 = vector.broadcast %200 : vector<32x1xf32> to vector<32x32xf32>
    %209 = arith.subf %196, %208 : vector<32x32xf32>
    %cst_68 = arith.constant 9.99999974E-6 : f32
    %210 = vector.broadcast %cst_68 : f32 to vector<32x1xf32>
    %211 = arith.addf %207, %210 : vector<32x1xf32>
    %212 = math.rsqrt %211 : vector<32x1xf32>
    %213 = vector.broadcast %212 : vector<32x1xf32> to vector<32x32xf32>
    %214 = arith.mulf %209, %213 : vector<32x32xf32>
    %215 = vector.broadcast %11 : vector<1x32xf32> to vector<32x32xf32>
    %216 = arith.mulf %214, %215 : vector<32x32xf32>
    %217 = vector.broadcast %12 : vector<1x32xf32> to vector<32x32xf32>
    %218 = arith.addf %216, %217 : vector<32x32xf32>
    %219 = vector.shape_cast %218 : vector<32x32xf32> to vector<2x16x32xf32>
    %220 = vector.extract_strided_slice %219 {offsets = [0, 8, 0], sizes = [2, 8, 32], strides = [1, 1, 1]} : vector<2x16x32xf32> to vector<2x8x32xf32>
    %c0_69 = arith.constant 0 : index
    %c0_70 = arith.constant 0 : index
    %c0_71 = arith.constant 0 : index
    %221 = vector.load %arg7[%c0_69, %c0_70, %c0_71] : memref<2x8x32xf32, #tpu.memory_space<vmem>>, vector<2x8x32xf32>
    tpu.vector_store %arg7[%c0_69, %c0_70, %c0_71], %220 {strides = array<i32>} : memref<2x8x32xf32, #tpu.memory_space<vmem>>, vector<2x8x32xf32>,
    return
  }
}

</mosaic_0001>

<bundles_post_ra>
// kernel: tpu_custom_call.1
= control target key start
LH: loop header
LB: loop body
LE: loop exit
PB: predicated region body
PF: predicated region fallthrough
CT: control target
= control target key end

     0   :  { %vm39_vm0 = vcmask 261120   ;;  %s2200_s0 = inlined_call_operand.vmem [shape: f32[8,32], index: 0, kind: input, shape index: {}]   ;;  %s2201_s1 = inlined_call_operand.vmem [shape: f32[2,8,32], index: 1, kind: input, shape index: {}]   ;;  %s2202_s2 = inlined_call_operand.vmem [shape: bf16[32,96], index: 2, kind: input, shape index: {}]   ;;  %s2203_s3 = inlined_call_operand.vmem [shape: bf16[32,32], index: 3, kind: input, shape index: {}]   ;;  %s2204_s4 = inlined_call_operand.vmem [shape: bf16[32,128], index: 4, kind: input, shape index: {}]   ;;  %s2205_s5 = inlined_call_operand.vmem [shape: bf16[128,32], index: 5, kind: input, shape index: {}]   ;;  %s2206_s6 = inlined_call_operand.vmem [shape: f32[8,128], index: 6, kind: input, shape index: {}]   ;;  %s2207_s7 = inlined_call_operand.hbm [shape: f32[2,8,32], index: 7, kind: output, shape index: {}]  }
   0x1   :  { %v28_v0 = vld [vmem:[%s2200_s0] sm:$0xff]  ;;  %v30_v1 = vld [vmem:[%s2201_s1 + $0x8] sm:$0xff] }
   0x2   :  { %v29_v2 = vld [vmem:[%s2201_s1] sm:$0xff]  ;;  %v40_v3 = vsel %vm39_vm0, %v28_v0, 0.0  ;;  %v46_v4 = vsel %vm39_vm0, %v30_v1, 0.0 }
   0x3   :  { %v43_v5 = vsel %vm39_vm0, %v29_v2, 0.0  ;;  %41 = vadd.xlane.f32.xlu0 %v40_v3  ;;  %47 = vadd.xlane.f32.xlu1 %v46_v4 }
   0x7   :  { %44 = vadd.xlane.f32.xlu0 %v43_v5 }
   0x8   :  { %12 = vsyncpa [#allocation3], 0  ;;  %v1689_v21 = vld [vmem:[%s2202_s2 + $0x8] sm:$0xff]   ;;  %v1690_v22 = vld [vmem:[%s2202_s2] sm:$0xff]   ;;  %vm205_vm1 = vcmask 64512   ;;  %s1818_s14 = smov 96   ;;  %v167_v58 = vlaneseq }
   0x9   :  { %1527 = vmatprep.subr.bf16.mxu0 %v1689_v21  ;;  %v1429_v34 = vld [vmem:[%s2206_s6] ss:$0 sm:$0xff]  ;;  %v1430_v39 = vld [vmem:[%s2206_s6 + $0x1] ss:$0 sm:$0xff]  ;;  %s1819_s15 = smov 64   ;;  %s1820_s16 = smov 88  }
   0xa   :  { %1528 = vmatpush3.bf16.msra.mxu0 %v1689_v21  ;;  %v168_v59 = vshrl.u32 %v167_v58, 7  ;;  %v173_v60 = vand.u32 127, %v167_v58  ;;  %s1821_s17 = smov 120   ;;  %s1822_s18 = smov 56  }
   0xb   :  { %1529 = vmatprep.subr.bf16.mxu0 %v1690_v22  ;;  %s1823_s19 = smov 80   ;;  %s1824_s20 = smov 112  }
   0xc   :  { %v171_v61 = vadd.s32 24, %v168_v59  ;;  %v174_v62 = vshra.s32 %v168_v59, 4  ;;  %v169_v63 = vadd.s32 8, %v168_v59  ;;  %vm185_vm3 = vcmp.ge.s32.totalorder %v168_v59, %v173_v60  ;;  %s1825_s21 = smov 48   ;;  %s1826_s22 = smov 72  }
   0xd   :  { %v183_v4 = vand.u32 15, %v173_v60  ;;  %s1827_s23 = smov 104   ;;  %s1828_s24 = smov 40  }
   0xe   :  { %1530 = vmatpush3.bf16.msra.mxu0 %v1690_v22  ;;  %v175_v3 = vshra.s32 %v169_v63, 4  ;;  %vm188_vm5 = vcmp.ge.s32.totalorder %v171_v61, %v173_v60  ;;  %vm186_vm8 = vcmp.ge.s32.totalorder %v169_v63, %v173_v60  ;;  %s1829_s25 = smov 8   ;;  %s1830_s26 = smov 16  }
   0xf   :  { %vm1917_vm9 = vcmp.ge.s32.totalorder %v183_v4, 4  ;;  %s1831_s8 = smov 24  }
  0x8c   :  { %v42_v6 = vpop.xlane.xlu0 %41  ;;  %v48_v7 = vpop.xlane.xlu1 %47 }
  0x8d   :  { %v50_v8 = vmul.f32 0.03125, %v42_v6  ;;  %v52_v9 = vmul.f32 0.03125, %v48_v7 }
  0x8f   :  { %v53_v10 = vsub.f32 %v28_v0, %v50_v8  ;;  %v55_v11 = vsub.f32 %v30_v1, %v52_v9  ;;  %v178_v0 = vshra.s32 %v173_v60, 4  ;;  %v177_v1 = vshra.s32 %v171_v61, 4 }
  0x90   :  { %v45_v12 = vpop.xlane.xlu0 %44 }
  0x91   :  { %v51_v13 = vmul.f32 0.03125, %v45_v12  ;;  %v56_v14 = vmul.f32 %v53_v10, %v53_v10  ;;  %v58_v15 = vmul.f32 %v55_v11, %v55_v11  ;;  %vm179_vm2 = vcmp.eq.s32.totalorder %v174_v62, %v178_v0 }
  0x92   :  { %vm182_vm4 = vcmp.eq.s32.totalorder %v177_v1, %v178_v0  ;;  %vm189_vm6 = vmand %vm179_vm2, %vm185_vm3  ;;  %vm180_vm7 = vcmp.eq.s32.totalorder %v175_v3, %v178_v0 }
  0x93   :  { %v54_v16 = vsub.f32 %v29_v2, %v51_v13  ;;  %v59_v17 = vsel %vm39_vm0, %v56_v14, 0.0  ;;  %v65_v18 = vsel %vm39_vm0, %v58_v15, 0.0  ;;  %v170_v2 = vadd.s32 16, %v168_v59  ;;  %vm192_vm10 = vmand %vm182_vm4, %vm188_vm5 }
  0x94   :  { %60 = vadd.xlane.f32.xlu1 %v59_v17  ;;  %vm1923_vm11 = vmand %vm189_vm6, %vm1917_vm9  ;;  %vm986_vm5 = vcmask 130048   ;;  %vm991_vm6 = vcmask 195584  }
  0x95   :  { %v57_v19 = vmul.f32 %v54_v16, %v54_v16  ;;  %v176_v5 = vshra.s32 %v170_v2, 4  ;;  %vm187_vm13 = vcmp.ge.s32.totalorder %v170_v2, %v173_v60  ;;  %vm190_vm14 = vmand %vm180_vm7, %vm186_vm8 }
  0x96   :  { %vm1929_vm15 = vmand %vm192_vm10, %vm1917_vm9 }
  0x97   :  { %v62_v20 = vsel %vm39_vm0, %v57_v19, 0.0  ;;  %vm181_vm12 = vcmp.eq.s32.totalorder %v176_v5, %v178_v0  ;;  %vm1938_vm3 = vmand %vm190_vm14, %vm1917_vm9 }
  0x98   :  { %66 = vadd.xlane.f32.xlu1 %v65_v18  ;;  %63 = vadd.xlane.f32.xlu0 %v62_v20  ;;  %vm191_vm2 = vmand %vm181_vm12, %vm187_vm13 }
  0x99   :  { %vm1946_vm4 = vmand %vm191_vm2, %vm1917_vm9 }
 0x11d   :  { %v61_v23 = vpop.xlane.xlu1 %60 }
 0x11e   :  { %v68_v24 = vmul.f32 0.03125, %v61_v23 }
 0x120   :  { %v71_v25 = vadd.f32 1e-05, %v68_v24 }
 0x121   :  { %v67_v26 = vpop.xlane.xlu1 %66  ;;  %v64_v27 = vpop.xlane.xlu0 %63 }
 0x122   :  { %1703 = vrsqrt.f32 %v71_v25  ;;  %v70_v28 = vmul.f32 0.03125, %v67_v26  ;;  %v69_v29 = vmul.f32 0.03125, %v64_v27 }
 0x124   :  { %v73_v30 = vadd.f32 1e-05, %v70_v28  ;;  %v72_v31 = vadd.f32 1e-05, %v69_v29 }
 0x126   :  { %1705 = vrsqrt.f32 %v73_v30 }
 0x127   :  { %1707 = vrsqrt.f32 %v72_v31 }
 0x12f   :  { %v1704_v32 = vpop.eup %1703 }
 0x130   :  { %v77_v33 = vmul.f32 %v1704_v32, %v53_v10 }
 0x132   :  { %v84_v38 = vmul.f32 %v1429_v34, %v77_v33 }
 0x133   :  { %v1706_v35 = vpop.eup %1705 }
 0x134   :  { %v1708_v36 = vpop.eup %1707  ;;  %v79_v37 = vmul.f32 %v1706_v35, %v55_v11  ;;  %v91_v43 = vadd.f32 %v1430_v39, %v84_v38 }
 0x135   :  { %v78_v40 = vmul.f32 %v1708_v36, %v54_v16 }
 0x136   :  { %v86_v41 = vmul.f32 %v1429_v34, %v79_v37 }
 0x137   :  { %v85_v42 = vmul.f32 %v1429_v34, %v78_v40 }
 0x138   :  { %v93_v44 = vadd.f32 %v1430_v39, %v86_v41 }
 0x139   :  { %v92_v45 = vadd.f32 %v1430_v39, %v85_v42 }
 0x13a   :  { %v95_v46 = vpack.c.bf16 %v93_v44, %v91_v43 }
 0x13b   :  { %v94_v47 = vpack.c.bf16 %v92_v45, %v91_v43 }
 0x13d   :  { %1531 = vmatprep.mubr.msk.bf16.mxu0 %vm39_vm0, %v94_v47 }
 0x13e   :  { %1532 = vmatmul.mubr.msk.bf16.vlgmr.msra.gmra.mxu0 %vm39_vm0, %v95_v46 }
 0x1fe   :  { %v1533_v48 = vpop.f32.mrf.mxu0 }
 0x200   :  { %v152_v49 = vpop.f32.mrf.mxu0 }
 0x202   :  { %v1534_v50 = vpop.f32.mrf.mxu0 }
 0x203   :  { %v1903_v51 = vpack.c.bf16 %v1534_v50, %v1533_v48 }
 0x204   :  { %v155_v52 = vpop.f32.mrf.mxu0 }
 0x205   :  { %v1905_v53 = vpack.c.bf16 %v155_v52, %v152_v49  ;;  %203 = vrot.lane.b32.xlu0 %v1903_v51, %s1818_s14 }
 0x207   :  { %201 = vrot.lane.b32.xlu1 %v1905_v53, %s1818_s14  ;;  %1539 = vmatprep.mubr.msk.bf16.mxu0 %vm205_vm1, %v1905_v53 }
 0x277   :  { %v204_v54 = vpop.permute.xlu0 %203 }
 0x278   :  { %v216_v55 = vsel %vm205_vm1, %v204_v54, 0  ;;  %1635 = vmatprep.subr.msk.bf16.mxu0 %vm205_vm1, %v204_v54 }
 0x279   :  { %1536 = vmatpush3.bf16.xpose.msra.mxu0 %v216_v55  ;;  %v202_v56 = vpop.permute.xlu1 %201 }
 0x27a   :  { %1636 = vmatprep.subr.msk.bf16.mxu0 %vm205_vm1, %v202_v56  ;;  %v213_v57 = vsel %vm205_vm1, %v202_v56, 0 }
 0x281   :  { %1538 = vmatpush3.bf16.xpose.msra.mxu0 %v213_v57 }
 0x288   :  { %1540 = vmatmul.mubr.msk.bf16.vlgmr.msra.gmra.mxu0 %vm205_vm1, %v1903_v51 }
 0x348   :  { %v1541_v6 = vpop.f32.mrf.mxu0 }
 0x349   :  { %v269_v18 = vmul.f32 0.35355338, %v1541_v6 }
 0x34a   :  { %v252_v8 = vpop.f32.mrf.mxu0 }
 0x34b   :  { %v267_v10 = vmul.f32 0.35355338, %v252_v8  ;;  %v273_v25 = vsel %vm1946_vm4, %v269_v18, -1e+30 }
 0x34c   :  { %v1542_v11 = vpop.f32.mrf.mxu0  ;;  %v281_v26 = vsel %vm39_vm0, %v273_v25, -inf }
 0x34d   :  { %v270_v13 = vmul.f32 0.35355338, %v1542_v11  ;;  %v271_v14 = vsel %vm1923_vm11, %v267_v10, -1e+30 }
 0x34e   :  { %v255_v15 = vpop.f32.mrf.mxu0  ;;  %v275_v16 = vsel %vm39_vm0, %v271_v14, -inf }
 0x34f   :  { %v268_v19 = vmul.f32 0.35355338, %v255_v15  ;;  %276 = vmax.xlane.f32.xlu1 %v275_v16  ;;  %v274_v20 = vsel %vm1929_vm15, %v270_v13, -1e+30 }
 0x350   :  { %v284_v23 = vsel %vm39_vm0, %v274_v20, -inf }
 0x351   :  { %v272_v22 = vsel %vm1938_vm3, %v268_v19, -1e+30 }
 0x352   :  { %v278_v24 = vsel %vm39_vm0, %v272_v22, -inf }
 0x353   :  { %285 = vmax.xlane.f32.xlu1 %v284_v23  ;;  %279 = vmax.xlane.f32.xlu0 %v278_v24 }
 0x357   :  { %282 = vmax.xlane.f32.xlu0 %v281_v26 }
 0x364   :  { %321 = vrot.lane.b32.xlu1 %v1905_v53, %s1819_s15 }
 0x3d8   :  { %v277_v27 = vpop.xlane.xlu1 %276 }
 0x3d9   :  { %v287_v32 = vsub.f32 %v271_v14, %v277_v27 }
 0x3db   :  { %v291_v37 = vmul.f32 1.442695, %v287_v32 }
 0x3dc   :  { %v286_v28 = vpop.xlane.xlu1 %285  ;;  %v280_v29 = vpop.xlane.xlu0 %279 }
 0x3dd   :  { %v290_v30 = vsub.f32 %v274_v20, %v286_v28  ;;  %v288_v31 = vsub.f32 %v272_v22, %v280_v29 }
 0x3df   :  { %v297_v33 = vmul.f32 1.442695, %v290_v30  ;;  %v293_v34 = vmul.f32 1.442695, %v288_v31 }
 0x3e0   :  { %v283_v35 = vpop.xlane.xlu0 %282  ;;  %v322_v47 = vpop.permute.xlu1 %321 }
 0x3e1   :  { %1709 = vpow2.f32 %v297_v33  ;;  %v289_v36 = vsub.f32 %v273_v25, %v283_v35 }
 0x3e2   :  { %1711 = vpow2.f32 %v293_v34 }
 0x3e3   :  { %v295_v38 = vmul.f32 1.442695, %v289_v36 }
 0x3e5   :  { %1713 = vpow2.f32 %v295_v38 }
 0x3e6   :  { %1715 = vpow2.f32 %v291_v37 }
 0x3ee   :  { %v1710_v39 = vpop.eup %1709 }
 0x3ef   :  { %v308_v40 = vsel %vm39_vm0, %v1710_v39, 0.0  ;;  %v1712_v41 = vpop.eup %1711 }
 0x3f0   :  { %309 = vadd.xlane.f32.xlu1 %v308_v40  ;;  %v302_v43 = vsel %vm39_vm0, %v1712_v41, 0.0 }
 0x3f2   :  { %v1714_v42 = vpop.eup %1713 }
 0x3f3   :  { %v305_v44 = vsel %vm39_vm0, %v1714_v42, 0.0  ;;  %v1716_v45 = vpop.eup %1715 }
 0x3f4   :  { %303 = vadd.xlane.f32.xlu1 %v302_v43  ;;  %306 = vadd.xlane.f32.xlu0 %v305_v44  ;;  %v299_v46 = vsel %vm39_vm0, %v1716_v45, 0.0 }
 0x3f8   :  { %300 = vadd.xlane.f32.xlu0 %v299_v46 }
 0x405   :  { %388 = vrot.lane.b32.xlu1 %v1903_v51, %s1820_s16 }
 0x409   :  { %386 = vrot.lane.b32.xlu1 %v1905_v53, %s1820_s16 }
 0x40d   :  { %384 = vrot.lane.b32.xlu1 %v1903_v51, %s1821_s17 }
 0x40e   :  { %323 = vrot.lane.b32.xlu0 %v1903_v51, %s1819_s15 }
 0x412   :  { %382 = vrot.lane.b32.xlu0 %v1905_v53, %s1821_s17 }
 0x479   :  { %v310_v48 = vpop.xlane.xlu1 %309 }
 0x47d   :  { %v304_v49 = vpop.xlane.xlu1 %303  ;;  %v307_v50 = vpop.xlane.xlu0 %306 }
 0x47e   :  { %1717 = vrcp.f32 %v307_v50 }
 0x47f   :  { %1719 = vrcp.f32 %v304_v49 }
 0x480   :  { %1721 = vrcp.f32 %v310_v48 }
 0x481   :  { %v301_v52 = vpop.xlane.xlu0 %300  ;;  %v389_v55 = vpop.permute.xlu1 %388 }
 0x482   :  { %1723 = vrcp.f32 %v301_v52  ;;  %v400_v2 = vsel %vm205_vm1, %v389_v55, 0 }
 0x485   :  { %v324_v54 = vpop.permute.xlu0 %323  ;;  %v387_v4 = vpop.permute.xlu1 %386 }
 0x486   :  { %1543 = vmatprep.subr.bf16.mxu0 %v324_v54  ;;  %v397_v5 = vsel %vm205_vm1, %v387_v4, 0 }
 0x487   :  { %1544 = vmatpush3.bf16.msra.mxu0 %v324_v54 }
 0x488   :  { %1545 = vmatprep.subr.bf16.mxu0 %v322_v47 }
 0x489   :  { %v383_v3 = vpop.permute.xlu0 %382  ;;  %v385_v6 = vpop.permute.xlu1 %384 }
 0x48b   :  { %1546 = vmatpush3.bf16.msra.mxu0 %v322_v47  ;;  %v1718_v56 = vpop.eup %1717 }
 0x48c   :  { %1637 = vmatprep.subr.msk.bf16.mxu0 %vm205_vm1, %v389_v55  ;;  %v1720_v57 = vpop.eup %1719  ;;  %v317_v60 = vmul.f32 %v1718_v56, %v1714_v42 }
 0x48d   :  { %v1722_v58 = vpop.eup %1721  ;;  %v316_v62 = vmul.f32 %v1720_v57, %v1712_v41 }
 0x48e   :  { %v318_v63 = vmul.f32 %v1722_v58, %v1710_v39 }
 0x48f   :  { %v1724_v59 = vpop.eup %1723 }
 0x490   :  { %v315_v61 = vmul.f32 %v1724_v59, %v1716_v45  ;;  %v320_v1 = vpack.c.bf16 %v318_v63, %v317_v60 }
 0x492   :  { %v319_v0 = vpack.c.bf16 %v316_v62, %v315_v61 }
 0x494   :  { %1547 = vmatprep.mubr.msk.bf16.mxu0 %vm39_vm0, %v319_v0 }
 0x495   :  { %1548 = vmatmul.mubr.msk.bf16.vlgmr.msra.gmra.mxu0 %vm39_vm0, %v320_v1 }
 0x496   :  { %1552 = vmatpush3.bf16.xpose.msra.mxu0 %v400_v2  ;;  %1555 = vmatprep.mubr.msk.bf16.mxu0 %vm205_vm1, %v383_v3 }
 0x497   :  { %1638 = vmatprep.subr.msk.bf16.mxu0 %vm205_vm1, %v387_v4 }
 0x49e   :  { %1554 = vmatpush3.bf16.xpose.msra.mxu0 %v397_v5 }
 0x4a5   :  { %1556 = vmatmul.mubr.msk.bf16.vlgmr.msra.gmra.mxu0 %vm205_vm1, %v385_v6 }
 0x555   :  { %v1977_v7 = vpop.f32.mrf.mxu0 }
 0x557   :  { %v1979_v8 = vpop.f32.mrf.mxu0 }
 0x559   :  { %v1981_v10 = vpop.f32.mrf.mxu0 }
 0x55b   :  { %v1983_v11 = vpop.f32.mrf.mxu0 }
 0x565   :  { %v1557_v13 = vpop.f32.mrf.mxu0 }
 0x566   :  { %v453_v15 = vmul.f32 0.35355338, %v1557_v13 }
 0x567   :  { %v436_v14 = vpop.f32.mrf.mxu0 }
 0x568   :  { %v451_v16 = vmul.f32 0.35355338, %v436_v14  ;;  %v457_v25 = vsel %vm1946_vm4, %v453_v15, -1e+30 }
 0x569   :  { %v1558_v18 = vpop.f32.mrf.mxu0  ;;  %v465_v27 = vsel %vm39_vm0, %v457_v25, -inf }
 0x56a   :  { %v455_v19 = vsel %vm1923_vm11, %v451_v16, -1e+30  ;;  %v454_v23 = vmul.f32 0.35355338, %v1558_v18 }
 0x56b   :  { %v439_v20 = vpop.f32.mrf.mxu0  ;;  %v459_v22 = vsel %vm39_vm0, %v455_v19, -inf }
 0x56c   :  { %v452_v24 = vmul.f32 0.35355338, %v439_v20  ;;  %460 = vmax.xlane.f32.xlu0 %v459_v22  ;;  %v458_v29 = vsel %vm1929_vm15, %v454_v23, -1e+30 }
 0x56d   :  { %v468_v30 = vsel %vm39_vm0, %v458_v29, -inf }
 0x56e   :  { %v456_v26 = vsel %vm1938_vm3, %v452_v24, -1e+30 }
 0x56f   :  { %v462_v28 = vsel %vm39_vm0, %v456_v26, -inf }
 0x570   :  { %466 = vmax.xlane.f32.xlu0 %v465_v27  ;;  %463 = vmax.xlane.f32.xlu1 %v462_v28 }
 0x574   :  { %469 = vmax.xlane.f32.xlu0 %v468_v30 }
 0x581   :  { %505 = vrot.lane.b32.xlu1 %v1905_v53, %s1822_s18 }
 0x5f5   :  { %v461_v31 = vpop.xlane.xlu0 %460 }
 0x5f6   :  { %v471_v32 = vsub.f32 %v455_v19, %v461_v31 }
 0x5f8   :  { %v475_v36 = vmul.f32 1.442695, %v471_v32 }
 0x5f9   :  { %v467_v33 = vpop.xlane.xlu0 %466  ;;  %v464_v34 = vpop.xlane.xlu1 %463 }
 0x5fa   :  { %v473_v35 = vsub.f32 %v457_v25, %v467_v33  ;;  %v472_v38 = vsub.f32 %v456_v26, %v464_v34 }
 0x5fc   :  { %v479_v37 = vmul.f32 1.442695, %v473_v35  ;;  %v477_v41 = vmul.f32 1.442695, %v472_v38 }
 0x5fd   :  { %v470_v39 = vpop.xlane.xlu0 %469  ;;  %v506_v52 = vpop.permute.xlu1 %505 }
 0x5fe   :  { %1725 = vpow2.f32 %v479_v37  ;;  %v474_v40 = vsub.f32 %v458_v29, %v470_v39 }
 0x5ff   :  { %1727 = vpow2.f32 %v475_v36 }
 0x600   :  { %v481_v42 = vmul.f32 1.442695, %v474_v40 }
 0x602   :  { %1729 = vpow2.f32 %v481_v42 }
 0x603   :  { %1731 = vpow2.f32 %v477_v41 }
 0x60b   :  { %v1726_v43 = vpop.eup %1725 }
 0x60c   :  { %v489_v44 = vsel %vm39_vm0, %v1726_v43, 0.0  ;;  %v1728_v45 = vpop.eup %1727 }
 0x60d   :  { %490 = vadd.xlane.f32.xlu0 %v489_v44  ;;  %v483_v47 = vsel %vm39_vm0, %v1728_v45, 0.0 }
 0x60f   :  { %v1730_v46 = vpop.eup %1729 }
 0x610   :  { %v492_v48 = vsel %vm39_vm0, %v1730_v46, 0.0  ;;  %v1732_v49 = vpop.eup %1731 }
 0x611   :  { %484 = vadd.xlane.f32.xlu0 %v483_v47  ;;  %493 = vadd.xlane.f32.xlu1 %v492_v48  ;;  %v486_v50 = vsel %vm39_vm0, %v1732_v49, 0.0 }
 0x615   :  { %487 = vadd.xlane.f32.xlu1 %v486_v50 }
 0x626   :  { %572 = vrot.lane.b32.xlu1 %v1903_v51, %s1823_s19 }
 0x627   :  { %507 = vrot.lane.b32.xlu0 %v1903_v51, %s1822_s18 }
 0x62a   :  { %570 = vrot.lane.b32.xlu1 %v1905_v53, %s1823_s19 }
 0x62b   :  { %566 = vrot.lane.b32.xlu0 %v1905_v53, %s1824_s20 }
 0x62e   :  { %568 = vrot.lane.b32.xlu1 %v1903_v51, %s1824_s20 }
 0x696   :  { %v491_v54 = vpop.xlane.xlu0 %490 }
 0x69a   :  { %v485_v55 = vpop.xlane.xlu0 %484  ;;  %v494_v56 = vpop.xlane.xlu1 %493 }
 0x69b   :  { %1733 = vrcp.f32 %v494_v56 }
 0x69c   :  { %1735 = vrcp.f32 %v485_v55 }
 0x69d   :  { %1737 = vrcp.f32 %v491_v54 }
 0x69e   :  { %v508_v57 = vpop.permute.xlu0 %507  ;;  %v488_v58 = vpop.xlane.xlu1 %487 }
 0x69f   :  { %1739 = vrcp.f32 %v488_v58  ;;  %1559 = vmatprep.subr.bf16.mxu1 %v508_v57 }
 0x6a0   :  { %1560 = vmatpush3.bf16.msra.mxu1 %v508_v57 }
 0x6a1   :  { %1561 = vmatprep.subr.bf16.mxu1 %v506_v52 }
 0x6a2   :  { %v573_v59 = vpop.permute.xlu1 %572  ;;  %v567_v6 = vpop.permute.xlu0 %566 }
 0x6a3   :  { %v584_v13 = vsel %vm205_vm1, %v573_v59, 0 }
 0x6a4   :  { %1562 = vmatpush3.bf16.msra.mxu1 %v506_v52 }
 0x6a5   :  { %1639 = vmatprep.subr.msk.bf16.mxu1 %vm205_vm1, %v573_v59 }
 0x6a6   :  { %v571_v14 = vpop.permute.xlu1 %570 }
 0x6a7   :  { %v581_v15 = vsel %vm205_vm1, %v571_v14, 0 }
 0x6a8   :  { %v1734_v60 = vpop.eup %1733 }
 0x6a9   :  { %v1736_v61 = vpop.eup %1735  ;;  %v502_v0 = vmul.f32 %v1734_v60, %v1730_v46 }
 0x6aa   :  { %v1738_v62 = vpop.eup %1737  ;;  %v499_v1 = vmul.f32 %v1736_v61, %v1728_v45  ;;  %v569_v16 = vpop.permute.xlu1 %568 }
 0x6ab   :  { %v501_v3 = vmul.f32 %v1738_v62, %v1726_v43 }
 0x6ac   :  { %v1740_v63 = vpop.eup %1739 }
 0x6ad   :  { %v500_v2 = vmul.f32 %v1740_v63, %v1732_v49  ;;  %v504_v5 = vpack.c.bf16 %v502_v0, %v501_v3 }
 0x6af   :  { %v503_v4 = vpack.c.bf16 %v500_v2, %v499_v1 }
 0x6b1   :  { %1563 = vmatprep.mubr.msk.bf16.mxu1 %vm39_vm0, %v503_v4 }
 0x6b2   :  { %1564 = vmatmul.mubr.msk.bf16.vlgmr.msra.gmra.mxu1 %vm39_vm0, %v504_v5 }
 0x6b3   :  { %1568 = vmatpush3.bf16.xpose.msra.mxu1 %v584_v13  ;;  %1571 = vmatprep.mubr.msk.bf16.mxu1 %vm205_vm1, %v567_v6 }
 0x6b4   :  { %1640 = vmatprep.subr.msk.bf16.mxu1 %vm205_vm1, %v571_v14 }
 0x6bb   :  { %1570 = vmatpush3.bf16.xpose.msra.mxu1 %v581_v15 }
 0x6c2   :  { %1572 = vmatmul.mubr.msk.bf16.vlgmr.msra.gmra.mxu1 %vm205_vm1, %v569_v16 }
 0x772   :  { %v2017_v18 = vpop.f32.mrf.mxu1 }
 0x774   :  { %v2019_v19 = vpop.f32.mrf.mxu1 }
 0x776   :  { %v2021_v20 = vpop.f32.mrf.mxu1 }
 0x777   :  { %v1664_v22 = vpack.i.bf16 %v2021_v20, %v2017_v18 }
 0x778   :  { %v2025_v23 = vpop.f32.mrf.mxu1 }
 0x779   :  { %v1659_v24 = vpack.i.bf16 %v2025_v23, %v2019_v19 }
 0x782   :  { %v1573_v25 = vpop.f32.mrf.mxu1 }
 0x783   :  { %v637_v27 = vmul.f32 0.35355338, %v1573_v25 }
 0x784   :  { %v620_v26 = vpop.f32.mrf.mxu1 }
 0x785   :  { %v635_v28 = vmul.f32 0.35355338, %v620_v26  ;;  %v641_v35 = vsel %vm1946_vm4, %v637_v27, -1e+30 }
 0x786   :  { %v1574_v29 = vpop.f32.mrf.mxu1  ;;  %v649_v37 = vsel %vm39_vm0, %v641_v35, -inf }
 0x787   :  { %v639_v30 = vsel %vm1923_vm11, %v635_v28, -1e+30  ;;  %v638_v33 = vmul.f32 0.35355338, %v1574_v29 }
 0x788   :  { %v623_v31 = vpop.f32.mrf.mxu1  ;;  %v643_v32 = vsel %vm39_vm0, %v639_v30, -inf }
 0x789   :  { %v636_v34 = vmul.f32 0.35355338, %v623_v31  ;;  %644 = vmax.xlane.f32.xlu0 %v643_v32  ;;  %v642_v39 = vsel %vm1929_vm15, %v638_v33, -1e+30 }
 0x78a   :  { %v652_v40 = vsel %vm39_vm0, %v642_v39, -inf }
 0x78b   :  { %v640_v36 = vsel %vm1938_vm3, %v636_v34, -1e+30 }
 0x78c   :  { %v646_v38 = vsel %vm39_vm0, %v640_v36, -inf }
 0x78d   :  { %650 = vmax.xlane.f32.xlu0 %v649_v37  ;;  %647 = vmax.xlane.f32.xlu1 %v646_v38 }
 0x791   :  { %653 = vmax.xlane.f32.xlu0 %v652_v40 }
 0x79e   :  { %689 = vrot.lane.b32.xlu1 %v1905_v53, %s1825_s21 }
 0x812   :  { %v645_v41 = vpop.xlane.xlu0 %644 }
 0x813   :  { %v655_v42 = vsub.f32 %v639_v30, %v645_v41 }
 0x815   :  { %v659_v46 = vmul.f32 1.442695, %v655_v42 }
 0x816   :  { %v651_v43 = vpop.xlane.xlu0 %650  ;;  %v648_v44 = vpop.xlane.xlu1 %647 }
 0x817   :  { %v657_v45 = vsub.f32 %v641_v35, %v651_v43  ;;  %v656_v48 = vsub.f32 %v640_v36, %v648_v44 }
 0x819   :  { %v663_v47 = vmul.f32 1.442695, %v657_v45  ;;  %v661_v52 = vmul.f32 1.442695, %v656_v48 }
 0x81a   :  { %v654_v49 = vpop.xlane.xlu0 %653  ;;  %v690_v63 = vpop.permute.xlu1 %689 }
 0x81b   :  { %1741 = vpow2.f32 %v663_v47  ;;  %v658_v50 = vsub.f32 %v642_v39, %v654_v49 }
 0x81c   :  { %1743 = vpow2.f32 %v659_v46 }
 0x81d   :  { %v665_v54 = vmul.f32 1.442695, %v658_v50 }
 0x81f   :  { %1745 = vpow2.f32 %v665_v54 }
 0x820   :  { %1747 = vpow2.f32 %v661_v52 }
 0x828   :  { %v1742_v55 = vpop.eup %1741 }
 0x829   :  { %v673_v56 = vsel %vm39_vm0, %v1742_v55, 0.0  ;;  %v1744_v57 = vpop.eup %1743 }
 0x82a   :  { %674 = vadd.xlane.f32.xlu0 %v673_v56  ;;  %v667_v59 = vsel %vm39_vm0, %v1744_v57, 0.0 }
 0x82c   :  { %v1746_v58 = vpop.eup %1745 }
 0x82d   :  { %v676_v60 = vsel %vm39_vm0, %v1746_v58, 0.0  ;;  %v1748_v61 = vpop.eup %1747 }
 0x82e   :  { %668 = vadd.xlane.f32.xlu0 %v667_v59  ;;  %677 = vadd.xlane.f32.xlu1 %v676_v60  ;;  %v670_v62 = vsel %vm39_vm0, %v1748_v61, 0.0 }
 0x832   :  { %671 = vadd.xlane.f32.xlu1 %v670_v62 }
 0x843   :  { %756 = vrot.lane.b32.xlu1 %v1903_v51, %s1826_s22 }
 0x844   :  { %691 = vrot.lane.b32.xlu0 %v1903_v51, %s1825_s21 }
 0x847   :  { %754 = vrot.lane.b32.xlu1 %v1905_v53, %s1826_s22 }
 0x848   :  { %750 = vrot.lane.b32.xlu0 %v1905_v53, %s1827_s23 }
 0x84b   :  { %752 = vrot.lane.b32.xlu1 %v1903_v51, %s1827_s23 }
 0x8b3   :  { %v675_v0 = vpop.xlane.xlu0 %674 }
 0x8b7   :  { %v669_v1 = vpop.xlane.xlu0 %668  ;;  %v678_v2 = vpop.xlane.xlu1 %677 }
 0x8b8   :  { %1749 = vrcp.f32 %v678_v2 }
 0x8b9   :  { %1751 = vrcp.f32 %v669_v1 }
 0x8ba   :  { %1753 = vrcp.f32 %v675_v0 }
 0x8bb   :  { %v692_v3 = vpop.permute.xlu0 %691  ;;  %v672_v4 = vpop.xlane.xlu1 %671 }
 0x8bc   :  { %1755 = vrcp.f32 %v672_v4  ;;  %1575 = vmatprep.subr.bf16.mxu0 %v692_v3 }
 0x8bd   :  { %1576 = vmatpush3.bf16.msra.mxu0 %v692_v3 }
 0x8be   :  { %1577 = vmatprep.subr.bf16.mxu0 %v690_v63 }
 0x8bf   :  { %v757_v5 = vpop.permute.xlu1 %756  ;;  %v751_v30 = vpop.permute.xlu0 %750 }
 0x8c0   :  { %v768_v31 = vsel %vm205_vm1, %v757_v5, 0 }
 0x8c1   :  { %1578 = vmatpush3.bf16.msra.mxu0 %v690_v63 }
 0x8c2   :  { %1641 = vmatprep.subr.msk.bf16.mxu0 %vm205_vm1, %v757_v5 }
 0x8c3   :  { %v755_v32 = vpop.permute.xlu1 %754 }
 0x8c4   :  { %v765_v33 = vsel %vm205_vm1, %v755_v32, 0 }
 0x8c5   :  { %v1750_v6 = vpop.eup %1749 }
 0x8c6   :  { %v1752_v13 = vpop.eup %1751  ;;  %v686_v16 = vmul.f32 %v1750_v6, %v1746_v58 }
 0x8c7   :  { %v1754_v14 = vpop.eup %1753  ;;  %v683_v25 = vmul.f32 %v1752_v13, %v1744_v57  ;;  %v753_v34 = vpop.permute.xlu1 %752 }
 0x8c8   :  { %v685_v27 = vmul.f32 %v1754_v14, %v1742_v55 }
 0x8c9   :  { %v1756_v15 = vpop.eup %1755 }
 0x8ca   :  { %v684_v26 = vmul.f32 %v1756_v15, %v1748_v61  ;;  %v688_v29 = vpack.c.bf16 %v686_v16, %v685_v27 }
 0x8cc   :  { %v687_v28 = vpack.c.bf16 %v684_v26, %v683_v25 }
 0x8ce   :  { %1579 = vmatprep.mubr.msk.bf16.mxu0 %vm39_vm0, %v687_v28 }
 0x8cf   :  { %1580 = vmatmul.mubr.msk.bf16.vlgmr.msra.gmra.mxu0 %vm39_vm0, %v688_v29 }
 0x8d0   :  { %1584 = vmatpush3.bf16.xpose.msra.mxu0 %v768_v31  ;;  %1587 = vmatprep.mubr.msk.bf16.mxu0 %vm205_vm1, %v751_v30 }
 0x8d1   :  { %1642 = vmatprep.subr.msk.bf16.mxu0 %vm205_vm1, %v755_v32 }
 0x8d8   :  { %1586 = vmatpush3.bf16.xpose.msra.mxu0 %v765_v33  ;;  %v1691_v33 = vld [vmem:[%s2203_s3 + $0x8] sm:$0xff]  }
 0x8df   :  { %1588 = vmatmul.mubr.msk.bf16.vlgmr.msra.gmra.mxu0 %vm205_vm1, %v753_v34  ;;  %v1692_v34 = vld [vmem:[%s2203_s3] sm:$0xff]  }
 0x98f   :  { %v1581_v35 = vpop.f32.mrf.mxu0 }
 0x991   :  { %v735_v36 = vpop.f32.mrf.mxu0 }
 0x993   :  { %v1582_v37 = vpop.f32.mrf.mxu0 }
 0x994   :  { %v1674_v38 = vpack.i.bf16 %v1582_v37, %v1581_v35 }
 0x995   :  { %v738_v39 = vpop.f32.mrf.mxu0 }
 0x996   :  { %v1669_v40 = vpack.i.bf16 %v738_v39, %v735_v36 }
 0x99f   :  { %v1589_v41 = vpop.f32.mrf.mxu0 }
 0x9a0   :  { %v821_v43 = vmul.f32 0.35355338, %v1589_v41 }
 0x9a1   :  { %v804_v42 = vpop.f32.mrf.mxu0 }
 0x9a2   :  { %v819_v44 = vmul.f32 0.35355338, %v804_v42  ;;  %v825_v52 = vsel %vm1946_vm4, %v821_v43, -1e+30 }
 0x9a3   :  { %v1590_v45 = vpop.f32.mrf.mxu0  ;;  %v833_v55 = vsel %vm39_vm0, %v825_v52, -inf }
 0x9a4   :  { %v823_v46 = vsel %vm1923_vm11, %v819_v44, -1e+30  ;;  %v822_v49 = vmul.f32 0.35355338, %v1590_v45 }
 0x9a5   :  { %v807_v47 = vpop.f32.mrf.mxu0  ;;  %v827_v48 = vsel %vm39_vm0, %v823_v46, -inf }
 0x9a6   :  { %v820_v50 = vmul.f32 0.35355338, %v807_v47  ;;  %828 = vmax.xlane.f32.xlu0 %v827_v48  ;;  %v826_v9 = vsel %vm1929_vm15, %v822_v49, -1e+30 }
 0x9a7   :  { %v836_v57 = vsel %vm39_vm0, %v826_v9, -inf }
 0x9a8   :  { %v824_v54 = vsel %vm1938_vm3, %v820_v50, -1e+30 }
 0x9a9   :  { %v830_v56 = vsel %vm39_vm0, %v824_v54, -inf }
 0x9aa   :  { %834 = vmax.xlane.f32.xlu0 %v833_v55  ;;  %831 = vmax.xlane.f32.xlu1 %v830_v56 }
 0x9ae   :  { %837 = vmax.xlane.f32.xlu0 %v836_v57 }
 0xa2f   :  { %v829_v58 = vpop.xlane.xlu0 %828 }
 0xa30   :  { %v839_v59 = vsub.f32 %v823_v46, %v829_v58 }
 0xa32   :  { %v843_v62 = vmul.f32 1.442695, %v839_v59 }
 0xa33   :  { %v835_v60 = vpop.xlane.xlu0 %834  ;;  %v832_v21 = vpop.xlane.xlu1 %831 }
 0xa34   :  { %v841_v61 = vsub.f32 %v825_v52, %v835_v60  ;;  %v840_v63 = vsub.f32 %v824_v54, %v832_v21 }
 0xa36   :  { %v847_v17 = vmul.f32 1.442695, %v841_v61  ;;  %v845_v2 = vmul.f32 1.442695, %v840_v63 }
 0xa37   :  { %v838_v0 = vpop.xlane.xlu0 %837 }
 0xa38   :  { %1757 = vpow2.f32 %v847_v17  ;;  %v842_v1 = vsub.f32 %v826_v9, %v838_v0 }
 0xa39   :  { %1759 = vpow2.f32 %v843_v62 }
 0xa3a   :  { %v849_v3 = vmul.f32 1.442695, %v842_v1 }
 0xa3c   :  { %1761 = vpow2.f32 %v849_v3 }
 0xa3d   :  { %1763 = vpow2.f32 %v845_v2 }
 0xa45   :  { %v1758_v12 = vpop.eup %1757 }
 0xa46   :  { %v857_v4 = vsel %vm39_vm0, %v1758_v12, 0.0  ;;  %v1760_v5 = vpop.eup %1759 }
 0xa47   :  { %858 = vadd.xlane.f32.xlu0 %v857_v4  ;;  %v851_v13 = vsel %vm39_vm0, %v1760_v5, 0.0 }
 0xa49   :  { %v1762_v6 = vpop.eup %1761 }
 0xa4a   :  { %v860_v14 = vsel %vm39_vm0, %v1762_v6, 0.0  ;;  %v1764_v15 = vpop.eup %1763 }
 0xa4b   :  { %852 = vadd.xlane.f32.xlu0 %v851_v13  ;;  %861 = vadd.xlane.f32.xlu1 %v860_v14  ;;  %v854_v16 = vsel %vm39_vm0, %v1764_v15, 0.0 }
 0xa4f   :  { %855 = vadd.xlane.f32.xlu1 %v854_v16 }
 0xa60   :  { %873 = vrot.lane.b32.xlu1 %v1905_v53, %s1828_s24 }
 0xa61   :  { %875 = vrot.lane.b32.xlu0 %v1903_v51, %s1828_s24 }
 0xa64   :  { %1660 = vrot.lane.b32.xlu1 %v1659_v24, %s1829_s25 }
 0xa65   :  { %1670 = vrot.lane.b32.xlu0 %v1669_v40, %s1830_s26 }
 0xa68   :  { %1665 = vrot.lane.b32.xlu1 %v1664_v22, %s1829_s25 }
 0xa6c   :  { %1675 = vrot.lane.b32.xlu1 %v1674_v38, %s1830_s26 }
 0xad0   :  { %v859_v25 = vpop.xlane.xlu0 %858 }
 0xad4   :  { %v853_v26 = vpop.xlane.xlu0 %852  ;;  %v862_v27 = vpop.xlane.xlu1 %861 }
 0xad5   :  { %1765 = vrcp.f32 %v862_v27  ;;  %v1795_v27 = vld [vmem:[%s2201_s1 + $0x8] sm:$0xff] }
 0xad6   :  { %1767 = vrcp.f32 %v853_v26 }
 0xad7   :  { %1769 = vrcp.f32 %v859_v25  ;;  %v1794_v25 = vld [vmem:[%s2201_s1] sm:$0xff] }
 0xad8   :  { %v876_v51 = vpop.permute.xlu0 %875  ;;  %v856_v53 = vpop.xlane.xlu1 %855 }
 0xad9   :  { %1771 = vrcp.f32 %v856_v53  ;;  %1591 = vmatprep.subr.bf16.mxu1 %v876_v51 }
 0xada   :  { %1592 = vmatpush3.bf16.msra.mxu1 %v876_v51 }
 0xadc   :  { %v874_v19 = vpop.permute.xlu1 %873  ;;  %v1671_v46 = vpop.permute.xlu0 %1670 }
 0xadd   :  { %1593 = vmatprep.subr.bf16.mxu1 %v874_v19  ;;  %v1673_v57 = vunpack.i.h.bf16 %v1671_v46  ;;  %v1672_v58 = vunpack.i.l.bf16 %v1671_v46 }
 0xade   :  { %1594 = vmatpush3.bf16.msra.mxu1 %v874_v19 }
 0xadf   :  { %1599 = vmatprep.subr.bf16.mxu1 %v1691_v33 }
 0xae0   :  { %v1661_v41 = vpop.permute.xlu1 %1660 }
 0xae1   :  { %v1663_v43 = vunpack.i.h.bf16 %v1661_v41  ;;  %v1662_v45 = vunpack.i.l.bf16 %v1661_v41 }
 0xae2   :  { %v1766_v23 = vpop.eup %1765 }
 0xae3   :  { %v1768_v24 = vpop.eup %1767  ;;  %v870_v20 = vmul.f32 %v1766_v23, %v1762_v6  ;;  %v983_v52 = vsel %vm205_vm1, %v1983_v11, %v1663_v43  ;;  %v982_v55 = vsel %vm205_vm1, %v1979_v8, %v1662_v45  ;;  %v1694_v45 = vld [vmem:[%s2204_s4] sm:$0xff]  }
 0xae4   :  { %v1770_v28 = vpop.eup %1769  ;;  %v867_v22 = vmul.f32 %v1768_v24, %v1760_v5  ;;  %v1666_v42 = vpop.permute.xlu1 %1665  ;;  %v987_v0 = vsel %vm986_vm5, %v982_v55, %v1672_v58  ;;  %v988_v1 = vsel %vm986_vm5, %v983_v52, %v1673_v57  ;;  %v1793_v5 = vld [vmem:[%s2200_s0] sm:$0xff] }
 0xae5   :  { %v869_v30 = vmul.f32 %v1770_v28, %v1758_v12  ;;  %v1668_v47 = vunpack.i.h.bf16 %v1666_v42  ;;  %v1667_v48 = vunpack.i.l.bf16 %v1666_v42 }
 0xae6   :  { %v1772_v18 = vpop.eup %1771 }
 0xae7   :  { %v868_v29 = vmul.f32 %v1772_v18, %v1764_v15  ;;  %v872_v32 = vpack.c.bf16 %v870_v20, %v869_v30  ;;  %v985_v59 = vsel %vm205_vm1, %v1981_v10, %v1668_v47  ;;  %v984_v60 = vsel %vm205_vm1, %v1977_v7, %v1667_v48 }
 0xae8   :  { %v1676_v44 = vpop.permute.xlu1 %1675 }
 0xae9   :  { %v871_v31 = vpack.c.bf16 %v868_v29, %v867_v22  ;;  %v1678_v49 = vunpack.i.h.bf16 %v1676_v44  ;;  %v1677_v50 = vunpack.i.l.bf16 %v1676_v44  ;;  %v1693_v44 = vld [vmem:[%s2204_s4 + $0x8] sm:$0xff]   ;;  %s1832_s4 = smov [#allocation2]  }
 0xaea   :  { %1607 = vmatprep.subr.bf16.mxu0 %v1693_v44  ;;  %s1418_s15 = sshll.u32 %s1832_s4, 4  ;;  %s1419_s15 = int_to_ptr.vmem [resolvable:$true] %s1418_s15 }
 0xaeb   :  { %1595 = vmatprep.mubr.msk.bf16.mxu1 %vm39_vm0, %v871_v31  ;;  %v989_v61 = vsel %vm986_vm5, %v984_v60, %v1677_v50  ;;  %v990_v11 = vsel %vm986_vm5, %v985_v59, %v1678_v49  ;;  %1608 = vmatpush3.bf16.msra.mxu0 %v1693_v44  ;;  %s1796_s16 = scalar_lea.vmem %s1419_s15, 256  ;;  %p1801_p1 = scmp.lt.s32.totalorder %s1419_s15, %s1419_s15 }
 0xaec   :  { %1596 = vmatmul.mubr.msk.bf16.vlgmr.msra.gmra.mxu1 %vm39_vm0, %v872_v32  ;;  %1609 = vmatprep.subr.bf16.mxu0 %v1694_v45  ;;  %p1797_p0 = scmp.ne.s32.totalorder %s1419_s15, %s1796_s16  ;;  %p1802_p2 = scmp.lt.s32.totalorder %s1796_s16, %s1796_s16 }
 0xaed   :  { %1600 = vmatpush3.bf16.msra.mxu1 %v1691_v33 }
 0xaee   :  { %1601 = vmatprep.subr.bf16.mxu1 %v1692_v34  ;;  %p1803_p3 = por %p1802_p2, %p1801_p1 }
 0xaef   :  { %1610 = vmatpush3.bf16.msra.mxu0 %v1694_v45 }
 0xaf0   :  { %p1804_p4 = pnand %p1803_p3, %p1797_p0 }
 0xaf1   :  { %1602 = vmatpush3.bf16.msra.mxu1 %v1692_v34 }
 0xbac   :  { %v1597_v35 = vpop.f32.mrf.mxu1 }
 0xbae   :  { %v919_v36 = vpop.f32.mrf.mxu1 }
 0xbb0   :  { %v1598_v37 = vpop.f32.mrf.mxu1 }
 0xbb1   :  { %v1684_v38 = vpack.i.bf16 %v1598_v37, %v1597_v35 }
 0xbb2   :  { %v922_v39 = vpop.f32.mrf.mxu1 }
 0xbb3   :  { %v1679_v40 = vpack.i.bf16 %v922_v39, %v919_v36  ;;  %1685 = vrot.lane.b32.xlu1 %v1684_v38, %s1831_s8 }
 0xbb5   :  { %1680 = vrot.lane.b32.xlu0 %v1679_v40, %s1831_s8 }
 0xc25   :  { %v1686_v54 = vpop.permute.xlu1 %1685 }
 0xc26   :  { %v1688_v56 = vunpack.i.h.bf16 %v1686_v54  ;;  %v1687_v9 = vunpack.i.l.bf16 %v1686_v54 }
 0xc27   :  { %v1681_v21 = vpop.permute.xlu0 %1680 }
 0xc28   :  { %v1683_v62 = vunpack.i.h.bf16 %v1681_v21  ;;  %v1682_v17 = vunpack.i.l.bf16 %v1681_v21  ;;  %v994_v8 = vsel %vm991_vm6, %v989_v61, %v1687_v9  ;;  %v995_v63 = vsel %vm991_vm6, %v990_v11, %v1688_v56  ;;  %v1455_v21 = vld [vmem:[%s2206_s6 + $0x2] ss:$0 sm:$0xff] }
 0xc29   :  { %v997_v3 = vpack.c.bf16 %v995_v63, %v994_v8  ;;  %v1456_v63 = vld [vmem:[%s2206_s6 + $0x3] ss:$0 sm:$0xff] }
 0xc2a   :  { %v992_v10 = vsel %vm991_vm6, %v987_v0, %v1682_v17  ;;  %v993_v2 = vsel %vm991_vm6, %v988_v1, %v1683_v62 }
 0xc2b   :  { %v996_v7 = vpack.c.bf16 %v993_v2, %v992_v10 }
 0xc2d   :  { %1603 = vmatprep.mubr.msk.bf16.mxu1 %vm39_vm0, %v996_v7 }
 0xc2e   :  { %1604 = vmatmul.mubr.msk.bf16.vlgmr.msra.gmra.mxu1 %vm39_vm0, %v997_v3 }
 0xcee   :  { %v1605_v12 = vpop.f32.mrf.mxu1 }
 0xcef   :  { %v1071_v14 = vadd.f32 %v1793_v5, %v1605_v12 }
 0xcf0   :  { %v1054_v4 = vpop.f32.mrf.mxu1 }
 0xcf1   :  { %v1069_v6 = vadd.f32 %v1793_v5, %v1054_v4  ;;  %v1079_v53 = vsel %vm39_vm0, %v1071_v14, 0.0 }
 0xcf2   :  { %v1606_v13 = vpop.f32.mrf.mxu1 }
 0xcf3   :  { %v1073_v15 = vsel %vm39_vm0, %v1069_v6, 0.0  ;;  %v2125_v51 = vadd.f32 %v1795_v27, %v1606_v13  ;;  %v1699_v27 = vld [vmem:[%s2205_s5 + $0x18] sm:$0xff]  }
 0xcf4   :  { %1074 = vadd.xlane.f32.xlu0 %v1073_v15  ;;  %v1057_v16 = vpop.f32.mrf.mxu1  ;;  %v1696_v15 = vld [vmem:[%s2205_s5 + $0x30] sm:$0xff]  }
 0xcf5   :  { %v2120_v26 = vadd.f32 %v1794_v25, %v1057_v16  ;;  %v1082_v23 = vsel %vm39_vm0, %v2125_v51, 0.0  ;;  %v1697_v16 = vld [vmem:[%s2205_s5 + $0x28] sm:$0xff]   ;;  %v1698_v25 = vld [vmem:[%s2205_s5 + $0x20] sm:$0xff]  }
 0xcf7   :  { %v1076_v19 = vsel %vm39_vm0, %v2120_v26, 0.0 }
 0xcf8   :  { %1080 = vadd.xlane.f32.xlu0 %v1079_v53  ;;  %1077 = vadd.xlane.f32.xlu1 %v1076_v19  ;;  %v1700_v53 = vld [vmem:[%s2205_s5 + $0x10] sm:$0xff]   ;;  %v1701_v19 = vld [vmem:[%s2205_s5 + $0x8] sm:$0xff]  }
 0xcfc   :  { %1083 = vadd.xlane.f32.xlu0 %v1082_v23  ;;  %v1702_v23 = vld [vmem:[%s2205_s5] sm:$0xff]  }
 0xd7d   :  { %v1075_v24 = vpop.xlane.xlu0 %1074 }
 0xd7e   :  { %v1085_v28 = vmul.f32 0.03125, %v1075_v24  ;;  %v1457_v24 = vld [vmem:[%s2206_s6 + $0x6] ss:$0 sm:$0xff] }
 0xd80   :  { %v1089_v18 = vsub.f32 %v1069_v6, %v1085_v28 }
 0xd81   :  { %v1081_v20 = vpop.xlane.xlu0 %1080  ;;  %v1078_v22 = vpop.xlane.xlu1 %1077 }
 0xd82   :  { %v1087_v29 = vmul.f32 0.03125, %v1081_v20  ;;  %v1086_v30 = vmul.f32 0.03125, %v1078_v22  ;;  %v1093_v31 = vmul.f32 %v1089_v18, %v1089_v18 }
 0xd84   :  { %v1091_v32 = vsub.f32 %v1071_v14, %v1087_v29  ;;  %v1090_v33 = vsub.f32 %v2120_v26, %v1086_v30  ;;  %v1097_v34 = vsel %vm39_vm0, %v1093_v31, 0.0  ;;  %v1695_v14 = vld [vmem:[%s2205_s5 + $0x38] sm:$0xff]  }
 0xd85   :  { %1098 = vadd.xlane.f32.xlu0 %v1097_v34  ;;  %v1084_v35 = vpop.xlane.xlu0 %1083  ;;  %1615 = vmatprep.subr.bf16.mxu1 %v1695_v14 }
 0xd86   :  { %v1088_v36 = vmul.f32 0.03125, %v1084_v35  ;;  %v1095_v37 = vmul.f32 %v1091_v32, %v1091_v32  ;;  %v1094_v38 = vmul.f32 %v1090_v33, %v1090_v33  ;;  %1616 = vmatpush3.bf16.msra.mxu1 %v1695_v14 }
 0xd87   :  { %1617 = vmatprep.subr.bf16.mxu1 %v1696_v15 }
 0xd88   :  { %v1092_v39 = vsub.f32 %v2125_v51, %v1088_v36  ;;  %v1103_v40 = vsel %vm39_vm0, %v1095_v37, 0.0  ;;  %v1100_v41 = vsel %vm39_vm0, %v1094_v38, 0.0 }
 0xd89   :  { %1104 = vadd.xlane.f32.xlu0 %v1103_v40  ;;  %1101 = vadd.xlane.f32.xlu1 %v1100_v41 }
 0xd8a   :  { %v1096_v42 = vmul.f32 %v1092_v39, %v1092_v39  ;;  %1618 = vmatpush3.bf16.msra.mxu1 %v1696_v15 }
 0xd8b   :  { %1619 = vmatprep.subr.bf16.mxu1 %v1697_v16 }
 0xd8c   :  { %v1106_v43 = vsel %vm39_vm0, %v1096_v42, 0.0 }
 0xd8d   :  { %1107 = vadd.xlane.f32.xlu1 %v1106_v43 }
 0xd8e   :  { %1620 = vmatpush3.bf16.msra.mxu1 %v1697_v16 }
 0xd8f   :  { %1621 = vmatprep.subr.bf16.mxu1 %v1698_v25 }
 0xd92   :  { %1622 = vmatpush3.bf16.msra.mxu1 %v1698_v25 }
 0xd93   :  { %1623 = vmatprep.subr.bf16.mxu1 %v1699_v27 }
 0xd96   :  { %1624 = vmatpush3.bf16.msra.mxu1 %v1699_v27 }
 0xd97   :  { %1625 = vmatprep.subr.bf16.mxu1 %v1700_v53 }
 0xd9a   :  { %1626 = vmatpush3.bf16.msra.mxu1 %v1700_v53 }
 0xd9b   :  { %1627 = vmatprep.subr.bf16.mxu1 %v1701_v19 }
 0xd9e   :  { %1628 = vmatpush3.bf16.msra.mxu1 %v1701_v19 }
 0xd9f   :  { %1629 = vmatprep.subr.bf16.mxu1 %v1702_v23 }
 0xda2   :  { %1630 = vmatpush3.bf16.msra.mxu1 %v1702_v23 }
 0xe0e   :  { %v1099_v46 = vpop.xlane.xlu0 %1098 }
 0xe0f   :  { %v1109_v47 = vmul.f32 0.03125, %v1099_v46 }
 0xe11   :  { %v1113_v48 = vadd.f32 1e-05, %v1109_v47 }
 0xe12   :  { %v1105_v49 = vpop.xlane.xlu0 %1104  ;;  %v1102_v50 = vpop.xlane.xlu1 %1101 }
 0xe13   :  { %1773 = vrsqrt.f32 %v1113_v48  ;;  %v1111_v52 = vmul.f32 0.03125, %v1105_v49  ;;  %v1110_v54 = vmul.f32 0.03125, %v1102_v50 }
 0xe15   :  { %v1115_v55 = vadd.f32 1e-05, %v1111_v52  ;;  %v1114_v56 = vadd.f32 1e-05, %v1110_v54 }
 0xe16   :  { %v1108_v9 = vpop.xlane.xlu1 %1107 }
 0xe17   :  { %1775 = vrsqrt.f32 %v1115_v55  ;;  %v1112_v57 = vmul.f32 0.03125, %v1108_v9 }
 0xe18   :  { %1777 = vrsqrt.f32 %v1114_v56 }
 0xe19   :  { %v1116_v58 = vadd.f32 1e-05, %v1112_v57 }
 0xe1b   :  { %1779 = vrsqrt.f32 %v1116_v58 }
 0xe20   :  { %v1774_v59 = vpop.eup %1773 }
 0xe21   :  { %v1121_v60 = vmul.f32 %v1774_v59, %v1089_v18 }
 0xe23   :  { %v1129_v8 = vmul.f32 %v1455_v21, %v1121_v60 }
 0xe24   :  { %v1776_v61 = vpop.eup %1775 }
 0xe25   :  { %v1778_v11 = vpop.eup %1777  ;;  %v1123_v62 = vmul.f32 %v1776_v61, %v1091_v32  ;;  %v1137_v7 = vadd.f32 %v1456_v63, %v1129_v8 }
 0xe26   :  { %v1122_v17 = vmul.f32 %v1778_v11, %v1090_v33 }
 0xe27   :  { %v1131_v2 = vmul.f32 %v1455_v21, %v1123_v62 }
 0xe28   :  { %v1780_v0 = vpop.eup %1779  ;;  %v1130_v1 = vmul.f32 %v1455_v21, %v1122_v17 }
 0xe29   :  { %v1124_v10 = vmul.f32 %v1780_v0, %v1092_v39  ;;  %v1139_v5 = vadd.f32 %v1456_v63, %v1131_v2 }
 0xe2a   :  { %v1138_v3 = vadd.f32 %v1456_v63, %v1130_v1 }
 0xe2b   :  { %v1132_v12 = vmul.f32 %v1455_v21, %v1124_v10 }
 0xe2c   :  { %v1141_v4 = vpack.c.bf16 %v1138_v3, %v1137_v7 }
 0xe2d   :  { %v1140_v6 = vadd.f32 %v1456_v63, %v1132_v12  ;;  %v1462_v12 = vld [vmem:[%s2206_s6 + $0x7] ss:$0 sm:$0xff] }
 0xe2e   :  { %1611 = vmatprep.mubr.msk.bf16.mxu0 %vm39_vm0, %v1141_v4 }
 0xe2f   :  { %v1142_v13 = vpack.c.bf16 %v1140_v6, %v1139_v5 }
 0xe31   :  { %1612 = vmatmul.mubr.msk.bf16.vlgmr.msra.gmra.mxu0 %vm39_vm0, %v1142_v13 }
 0xef1   :  { %v1613_v28 = vpop.f32.mrf.mxu0 }
 0xef2   :  { %v1212_v18 = vadd.f32 %v1613_v28, %v1457_v24 }
 0xef3   :  { %v1203_v20 = vpop.f32.mrf.mxu0 }
 0xef4   :  { %v1220_v22 = vmul.f32 %v1212_v18, %v1212_v18  ;;  %v1204_v29 = vadd.f32 %v1457_v24, %v1203_v20 }
 0xef5   :  { %v1614_v30 = vpop.f32.mrf.mxu0 }
 0xef6   :  { %v1224_v31 = vmul.f32 %v1220_v22, %v1212_v18  ;;  %v1218_v32 = vmul.f32 %v1204_v29, %v1204_v29  ;;  %v1215_v33 = vadd.f32 %v1614_v30, %v1457_v24 }
 0xef7   :  { %v1206_v34 = vpop.f32.mrf.mxu0 }
 0xef8   :  { %v1228_v35 = vmul.f32 0.044715, %v1224_v31  ;;  %v1222_v36 = vmul.f32 %v1218_v32, %v1204_v29  ;;  %v1221_v37 = vmul.f32 %v1215_v33, %v1215_v33  ;;  %v1207_v38 = vadd.f32 %v1457_v24, %v1206_v34 }
 0xefa   :  { %v1232_v39 = vadd.f32 %v1228_v35, %v1212_v18  ;;  %v1226_v40 = vmul.f32 0.044715, %v1222_v36  ;;  %v1225_v41 = vmul.f32 %v1221_v37, %v1215_v33  ;;  %v1219_v42 = vmul.f32 %v1207_v38, %v1207_v38  ;;  %v1471_v35 = vld [vmem:[%s2206_s6 + $0x4] ss:$0 sm:$0xff] }
 0xefc   :  { %v1236_v43 = vmul.f32 0.7978846, %v1232_v39  ;;  %v1230_v44 = vadd.f32 %v1226_v40, %v1204_v29  ;;  %v1229_v45 = vmul.f32 0.044715, %v1225_v41  ;;  %v1223_v46 = vmul.f32 %v1219_v42, %v1207_v38 }
 0xefe   :  { %v1234_v47 = vmul.f32 0.7978846, %v1230_v44  ;;  %v1233_v48 = vadd.f32 %v1229_v45, %v1215_v33  ;;  %v1227_v49 = vmul.f32 0.044715, %v1223_v46  ;;  %1781 = vtanh.f32 %v1236_v43 }
 0xf00   :  { %1783 = vtanh.f32 %v1234_v47  ;;  %v1237_v50 = vmul.f32 0.7978846, %v1233_v48  ;;  %v1231_v52 = vadd.f32 %v1227_v49, %v1207_v38 }
 0xf02   :  { %1785 = vtanh.f32 %v1237_v50  ;;  %v1235_v54 = vmul.f32 0.7978846, %v1231_v52 }
 0xf04   :  { %1787 = vtanh.f32 %v1235_v54 }
 0xf0b   :  { %v1782_v55 = vpop.eup %1781 }
 0xf0c   :  { %v1244_v58 = vadd.f32 1.0, %v1782_v55 }
 0xf0d   :  { %v1784_v56 = vpop.eup %1783 }
 0xf0e   :  { %v1242_v9 = vadd.f32 1.0, %v1784_v56  ;;  %v1248_v62 = vmul.f32 0.5, %v1244_v58 }
 0xf0f   :  { %v1786_v57 = vpop.eup %1785 }
 0xf10   :  { %v1245_v59 = vadd.f32 1.0, %v1786_v57  ;;  %v1246_v11 = vmul.f32 0.5, %v1242_v9  ;;  %v1252_v1 = vmul.f32 %v1248_v62, %v1212_v18 }
 0xf11   :  { %v1788_v60 = vpop.eup %1787 }
 0xf12   :  { %v1249_v21 = vmul.f32 0.5, %v1245_v59  ;;  %v1243_v61 = vadd.f32 1.0, %v1788_v60  ;;  %v1250_v63 = vmul.f32 %v1246_v11, %v1204_v29 }
 0xf14   :  { %v1247_v17 = vmul.f32 0.5, %v1243_v61  ;;  %v1253_v8 = vmul.f32 %v1249_v21, %v1215_v33 }
 0xf16   :  { %v1251_v0 = vmul.f32 %v1247_v17, %v1207_v38  ;;  %v1255_v2 = vpack.c.bf16 %v1253_v8, %v1252_v1  ;;  %v1472_v38 = vld [vmem:[%s2206_s6 + $0x5] ss:$0 sm:$0xff] }
 0xf18   :  { %v1254_v10 = vpack.c.bf16 %v1251_v0, %v1250_v63 }
 0xf1a   :  { %1631 = vmatprep.mubr.bf16.mxu1 %v1254_v10 }
 0xf1b   :  { %1632 = vmatmul.mubr.bf16.vlgmr.msra.gmra.mxu1 %v1255_v2 }
 0xfdb   :  { %v1633_v7 = vpop.f32.mrf.mxu1 }
 0xfdd   :  { %v1358_v3 = vpop.f32.mrf.mxu1 }
 0xfdf   :  { %v1634_v4 = vpop.f32.mrf.mxu1 }
 0xfe0   :  { %v1368_v5 = vadd.f32 %v1634_v4, %v1462_v12 }
 0xfe1   :  { %v1360_v6 = vpop.f32.mrf.mxu1 }
 0xfe2   :  { %v1361_v13 = vadd.f32 %v1462_v12, %v1360_v6  ;;  %v1372_v14 = vadd.f32 %v1368_v5, %v2125_v51 }
 0xfe4   :  { %v1376_v15 = vsel %vm39_vm0, %v1372_v14, 0.0  ;;  %v1371_v16 = vadd.f32 %v1361_v13, %v2120_v26 }
 0xfe5   :  { %1377 = vadd.xlane.f32.xlu1 %v1376_v15 }
 0xfe6   :  { %v1373_v25 = vsel %vm39_vm0, %v1371_v16, 0.0 }
 0xfe7   :  { %1374 = vadd.xlane.f32.xlu0 %v1373_v25 }
0x106e   :  { %v1378_v27 = vpop.xlane.xlu1 %1377 }
0x106f   :  { %v1380_v53 = vmul.f32 0.03125, %v1378_v27 }
0x1070   :  { %v1375_v19 = vpop.xlane.xlu0 %1374 }
0x1071   :  { %v1382_v23 = vsub.f32 %v1372_v14, %v1380_v53  ;;  %v1379_v24 = vmul.f32 0.03125, %v1375_v19 }
0x1073   :  { %v1381_v28 = vsub.f32 %v1371_v16, %v1379_v24  ;;  %v1384_v18 = vmul.f32 %v1382_v23, %v1382_v23 }
0x1075   :  { %v1388_v20 = vsel %vm39_vm0, %v1384_v18, 0.0  ;;  %v1383_v22 = vmul.f32 %v1381_v28, %v1381_v28 }
0x1076   :  { %1389 = vadd.xlane.f32.xlu1 %v1388_v20 }
0x1077   :  { %v1385_v51 = vsel %vm39_vm0, %v1383_v22, 0.0 }
0x1078   :  { %1386 = vadd.xlane.f32.xlu0 %v1385_v51 }
0x10ff   :  { %v1390_v29 = vpop.xlane.xlu1 %1389 }
0x1100   :  { %v1392_v26 = vmul.f32 0.03125, %v1390_v29 }
0x1101   :  { %v1387_v30 = vpop.xlane.xlu0 %1386 }
0x1102   :  { %v1394_v31 = vadd.f32 1e-05, %v1392_v26  ;;  %v1391_v32 = vmul.f32 0.03125, %v1387_v30 }
0x1104   :  { %1789 = vrsqrt.f32 %v1394_v31  ;;  %v1393_v33 = vadd.f32 1e-05, %v1391_v32 }
0x1106   :  { %1791 = vrsqrt.f32 %v1393_v33 }
0x1111   :  { %v1790_v34 = vpop.eup %1789 }
0x1112   :  { %v1398_v36 = vmul.f32 %v1790_v34, %v1382_v23 }
0x1113   :  { %v1792_v37 = vpop.eup %1791 }
0x1114   :  { %v1397_v39 = vmul.f32 %v1792_v37, %v1381_v28  ;;  %v1404_v40 = vmul.f32 %v1471_v35, %v1398_v36 }
0x1116   :  { %v1403_v41 = vmul.f32 %v1471_v35, %v1397_v39  ;;  %v1410_v42 = vadd.f32 %v1472_v38, %v1404_v40 }
0x1118   :  { %v1409_v43 = vadd.f32 %v1472_v38, %v1403_v41  ;;  %1412 = vst.msk [vmem:[#allocation2 + $0x8] sm:$0xff] %vm39_vm0, %v1410_v42 }
0x111a   :  { %1411 = vst.msk [vmem:[#allocation2] sm:$0xff] %vm39_vm0, %v1409_v43 }
0x111b   :  { %1807 = shalt.err (!%p1804_p4)
}
0x111c   :  { %s1833_s6 = smov 128  }
0x111d   :  { %1424 = dma.vmem_to_hbm [thread:$0]  %s1419_s15, 256, %s2207_s7, [#allocation3], %s1833_s6, %s1833_s6, %s1829_s25  }
0x111e   :  { %1816 = dma.done.wait [#allocation3], 256  }
0x111f   :  { %1817 = vsyncadd [#allocation3], 4294967040 }
0x1120   :  { %1428 = vsyncpa [#allocation3], 1 }

</bundles_post_ra>
